<compile_context>
chip_gen: v6e
topology: v6e:2x2x1
jax: 0.10.0
libtpu: 0.0.40
codegen_flags: <defaults>
</compile_context>

<pallas_src>
import functools

import numpy as np
import jax
import jax.numpy as jnp
from jax.experimental import pallas as pl
from jax.experimental.pallas import tpu as pltpu

EPS = 1e-5  # nn.GroupNorm default eps
_INV_SQRT2 = 0.7071067811865476


def _erf(x):
    # Abramowitz & Stegun 7.1.26 rational approximation, |err| <= 1.5e-7.
    # Only mul/add/div/exp/select -> guaranteed Mosaic lowering (EUP exp).
    p = 0.3275911
    a1, a2, a3, a4, a5 = (0.254829592, -0.284496736, 1.421413741,
                          -1.453152027, 1.061405429)
    z = jnp.abs(x)
    t = 1.0 / (1.0 + p * z)
    poly = ((((a5 * t + a4) * t + a3) * t + a2) * t + a1) * t
    y = 1.0 - poly * jnp.exp(-z * z)
    return jnp.where(x >= 0, y, -y)


def _gelu_exact(x):
    # erf-based GELU == torch.nn.GELU() default (error ~1.5e-7, far below bf16 noise)
    return 0.5 * x * (1.0 + _erf(x * _INV_SQRT2))


def _largest_divisor_leq(n, cap):
    cap = max(1, min(n, cap))
    for d in range(cap, 0, -1):
        if n % d == 0:
            return d
    return 1


def _make_double_conv_kernel(N, HW, W, Cin, Cmid, Cout, residual):
    inv_n1 = 1.0 / float(Cmid * HW)
    inv_n2 = 1.0 / float(Cout * HW)

    def kernel(mask_ref, sel_ref, selt_ref, x_ref,
               w1_ref, g1_ref, b1_ref, w2_ref, g2_ref, b2_ref, out_ref):
        sel = sel_ref[...]            # (N, Bt) f32: per-sample reduce selector
        selt = selt_ref[...]          # (Bt, N) f32: per-sample broadcast selector
        w1 = w1_ref[...]              # (Cmid, 9*Cin)  bf16 im2col weights
        w2 = w2_ref[...]              # (Cout, 9*Cmid) bf16 im2col weights
        g1, b1 = g1_ref[...], b1_ref[...]   # (Cmid, 1) f32
        g2, b2 = g2_ref[...], b2_ref[...]   # (Cout, 1) f32

        def conv3x3(h, w_cat):
            # h: (C, N) f32. 3x3 "SAME" conv as ONE im2col matmul: 9 lane-rolled,
            # boundary-masked copies stacked along sublanes, then a single MXU dot
            # with contraction K = 9*C (bf16 operands, f32 accumulation).
            taps = []
            for k in range(9):
                dy, dx = divmod(k, 3)
                offset = (dy - 1) * W + (dx - 1)
                shift = (-offset) % N              # static python int
                p = h if shift == 0 else pltpu.roll(h, shift=shift, axis=1)
                if k != 4:                          # center tap is always valid
                    p = p * mask_ref[k]             # (1, N) 0/1 boundary mask
                taps.append(p)
            col = jnp.concatenate(taps, axis=0).astype(jnp.bfloat16)   # (9*C, N)
            return jnp.dot(w_cat, col, preferred_element_type=jnp.float32)

        def groupnorm1(h, gamma, beta, inv_n):
            # GroupNorm(num_groups=1): stats over all C*HW elements of each sample.
            # Batch lives on lanes, so per-sample sums use a tiny selector matmul
            # and mean / inv-std are broadcast back the same way.
            colsum = jnp.sum(h, axis=0, keepdims=True)       # (1, N)
            colsq = jnp.sum(h * h, axis=0, keepdims=True)    # (1, N)
            s = jnp.dot(colsum, sel, preferred_element_type=jnp.float32)   # (1, Bt)
            ss = jnp.dot(colsq, sel, preferred_element_type=jnp.float32)   # (1, Bt)
            mean = s * inv_n
            # single-pass E[x^2]-E[x]^2 in f32, clamped at 0 (fine at these scales)
            var = jnp.maximum(ss * inv_n - mean * mean, 0.0)
            inv = jax.lax.rsqrt(var + EPS)
            mean_l = jnp.dot(mean, selt, preferred_element_type=jnp.float32)  # (1, N)
            inv_l = jnp.dot(inv, selt, preferred_element_type=jnp.float32)    # (1, N)
            return (h - mean_l) * inv_l * gamma + beta

        x = x_ref[...].astype(jnp.float32)             # (Cin, N)

        h1 = conv3x3(x, w1)                            # (Cmid, N)
        h1 = _gelu_exact(groupnorm1(h1, g1, b1, inv_n1))

        h2 = conv3x3(h1, w2)                           # (Cout, N)
        h2 = groupnorm1(h2, g2, b2, inv_n2)

        if residual:
            h2 = _gelu_exact(x + h2)

        out_ref[...] = h2.astype(out_ref.dtype)        # lane-dense, unmasked store

    return kernel


@functools.partial(jax.jit, static_argnames=("residual",))
def double_conv(x_nchw, w1, g1, b1, w2, g2, b2, residual=False):
    """x_nchw: (B, Cin, H, W); w1: (Cmid, Cin, 3, 3); w2: (Cout, Cmid, 3, 3)."""
    B, Cin, H, W = x_nchw.shape
    Cmid, Cout = w1.shape[0], w2.shape[0]
    if residual and Cin != Cout:
        raise ValueError("residual DoubleConv requires in_channels == out_channels")
    HW = H * W

    # Samples per grid step: as large as possible (amortize per-step overhead, fill
    # the MXU N axis), but keep >= 2 grid steps for the two v7x TensorCores.
    Bt = _largest_divisor_leq(B, min(64, max(B // 2, 1)))
    N = Bt * HW
    steps = B // Bt

    # One-time layout plumbing in the wrapper: channels -> sublanes,
    # sample-contiguous flattened spatial -> lanes.
    x_cn = jnp.transpose(x_nchw.reshape(B, Cin, HW), (1, 0, 2)).reshape(Cin, B * HW)

    # im2col weights: (Cout, Cin, 3, 3) -> (Cout, 9*Cin), tap-major / channel-minor;
    # bf16 for native MXU throughput (accumulation stays f32).
    w1_cat = jnp.transpose(w1, (0, 2, 3, 1)).reshape(Cmid, 9 * Cin).astype(jnp.bfloat16)
    w2_cat = jnp.transpose(w2, (0, 2, 3, 1)).reshape(Cout, 9 * Cmid).astype(jnp.bfloat16)
    g1_2d = g1.reshape(Cmid, 1).astype(jnp.float32)
    b1_2d = b1.reshape(Cmid, 1).astype(jnp.float32)
    g2_2d = g2.reshape(Cout, 1).astype(jnp.float32)
    b2_2d = b2.reshape(Cout, 1).astype(jnp.float32)

    # Precomputed constants: per-tap boundary masks and per-sample selectors.
    pos = np.arange(N)
    row = (pos % HW) // W
    col = pos % W
    masks_np = np.ones((9, 1, N), np.float32)
    for k in range(9):
        dy, dx = divmod(k, 3)
        valid = np.ones(N, np.bool_)
        if dy == 0:
            valid &= row >= 1
        elif dy == 2:
            valid &= row < H - 1
        if dx == 0:
            valid &= col >= 1
        elif dx == 2:
            valid &= col < W - 1
        masks_np[k, 0, :] = valid.astype(np.float32)
    sample_id = pos // HW
    sel_np = (sample_id[:, None] == np.arange(Bt)[None, :]).astype(np.float32)
    masks = jnp.asarray(masks_np)            # (9, 1, N) f32
    sel = jnp.asarray(sel_np)                # (N, Bt)  f32
    selt = jnp.asarray(np.ascontiguousarray(sel_np.T))   # (Bt, N) f32

    kernel = _make_double_conv_kernel(N, HW, W, Cin, Cmid, Cout, residual)

    # VMEM budget (v7x has only 64 MiB physical): estimate per-step footprint and
    # keep the scoped limit conservative.
    est = (2 * Cin * N * 4 + 2 * Cout * N * 4
           + (Cmid * 9 * Cin + Cout * 9 * Cmid) * 2
           + 9 * N * 4 + 2 * N * Bt * 4
           + (9 * Cin + 9 * Cmid) * N * 6
           + 8 * max(Cin, Cmid, Cout) * N * 4)
    vmem_limit = int(min(max(2 * est, 32 << 20), 48 << 20))

    itemsize = jnp.dtype(x_nchw.dtype).itemsize
    flops = 2 * B * HW * 9 * (Cin * Cmid + Cmid * Cout)
    transcendentals = B * HW * (Cmid + (Cout if residual else 0))
    bytes_accessed = ((x_cn.size + B * Cout * HW) * itemsize
                      + (w1_cat.size + w2_cat.size) * 2
                      + masks.size * 4 + 2 * N * Bt * 4)

    out_cn = pl.pallas_call(
        kernel,
        out_shape=jax.ShapeDtypeStruct((Cout, B * HW), x_nchw.dtype),
        grid_spec=pltpu.PrefetchScalarGridSpec(
            num_scalar_prefetch=0,
            grid=(steps,),
            in_specs=[
                pl.BlockSpec((9, 1, N), lambda b: (0, 0, 0)),      # boundary masks
                pl.BlockSpec((N, Bt), lambda b: (0, 0)),           # sel
                pl.BlockSpec((Bt, N), lambda b: (0, 0)),           # selT
                pl.BlockSpec((Cin, N), lambda b: (0, b)),          # x slab
                pl.BlockSpec((Cmid, 9 * Cin), lambda b: (0, 0)),   # w1 (im2col)
                pl.BlockSpec((Cmid, 1), lambda b: (0, 0)),         # gamma1
                pl.BlockSpec((Cmid, 1), lambda b: (0, 0)),         # beta1
                pl.BlockSpec((Cout, 9 * Cmid), lambda b: (0, 0)),  # w2 (im2col)
                pl.BlockSpec((Cout, 1), lambda b: (0, 0)),         # gamma2
                pl.BlockSpec((Cout, 1), lambda b: (0, 0)),         # beta2
            ],
            out_specs=pl.BlockSpec((Cout, N), lambda b: (0, b)),
        ),
        compiler_params=pltpu.CompilerParams(
            dimension_semantics=("parallel",),
            vmem_limit_bytes=vmem_limit),
        cost_estimate=pl.CostEstimate(
            flops=flops, transcendentals=transcendentals,
            bytes_accessed=bytes_accessed),
    )(masks, sel, selt, x_cn, w1_cat, g1_2d, b1_2d, w2_cat, g2_2d, b2_2d)

    out = jnp.transpose(out_cn.reshape(Cout, B, HW), (1, 0, 2))
    return out.reshape(B, Cout, H, W)


def init_params(key, in_channels, out_channels, mid_channels=None):
    if mid_channels is None:
        mid_channels = out_channels
    k1, k2 = jax.random.split(key)
    scale1 = (2.0 / (in_channels * 9)) ** 0.5
    scale2 = (2.0 / (mid_channels * 9)) ** 0.5
    w1 = scale1 * jax.random.normal(k1, (mid_channels, in_channels, 3, 3), jnp.float32)
    w2 = scale2 * jax.random.normal(k2, (out_channels, mid_channels, 3, 3), jnp.float32)
    # GroupNorm default init: weight=1, bias=0
    g1 = jnp.ones((mid_channels,), jnp.float32)
    b1 = jnp.zeros((mid_channels,), jnp.float32)
    g2 = jnp.ones((out_channels,), jnp.float32)
    b2 = jnp.zeros((out_channels,), jnp.float32)
    return w1, g1, b1, w2, g2, b2


def ref_double_conv(x, w1, g1, b1, w2, g2, b2, residual):
    """Pure-JAX f32 reference (NCHW), mirroring the PyTorch forward."""
    def conv(h, w):
        return jax.lax.conv_general_dilated(
            h, w, (1, 1), "SAME", dimension_numbers=("NCHW", "OIHW", "NCHW"))

    def gn1(h, g, b):  # GroupNorm with a single group
        mean = jnp.mean(h, axis=(1, 2, 3), keepdims=True)
        var = jnp.mean((h - mean) ** 2, axis=(1, 2, 3), keepdims=True)
        hn = (h - mean) * jax.lax.rsqrt(var + EPS)
        return hn * g[None, :, None, None] + b[None, :, None, None]

    h = jax.nn.gelu(gn1(conv(x, w1), g1, b1), approximate=False)
    h = gn1(conv(h, w2), g2, b2)
    if residual:
        h = jax.nn.gelu(x + h, approximate=False)
    return h


if __name__ == "__main__":
    key = jax.random.PRNGKey(0)
    kx, kb, kp1, kp2, kp3 = jax.random.split(key, 5)

    # bf16 MXU operands -> compare against the f32 reference at a bf16-appropriate tol.
    TOL = dict(atol=5e-2, rtol=5e-2)

    # Case 1: non-residual, in=4 -> out=8 channels, 16x16 spatial, batch 2.
    x = jax.random.normal(kx, (2, 4, 16, 16), jnp.float32)
    p1 = init_params(kp1, in_channels=4, out_channels=8)
    out1 = jax.block_until_ready(double_conv(x, *p1, residual=False))
    ref1 = ref_double_conv(x, *p1, residual=False)
    assert out1.shape == (2, 8, 16, 16)
    assert jnp.allclose(out1, ref1, **TOL), float(jnp.max(jnp.abs(out1 - ref1)))

    # Case 2: residual variant (requires in_channels == out_channels).
    p2 = init_params(kp2, in_channels=4, out_channels=4)
    out2 = jax.block_until_ready(double_conv(x, *p2, residual=True))
    ref2 = ref_double_conv(x, *p2, residual=True)
    assert out2.shape == (2, 4, 16, 16)
    assert jnp.allclose(out2, ref2, **TOL), float(jnp.max(jnp.abs(out2 - ref2)))

    # Case 3: batch folded onto the lane axis (Bt > 1) exercises cross-sample wrap masks.
    xb = jax.random.normal(kb, (8, 4, 16, 16), jnp.float32)
    p3 = init_params(kp3, in_channels=4, out_channels=8)
    out3 = jax.block_until_ready(double_conv(xb, *p3, residual=False))
    ref3 = ref_double_conv(xb, *p3, residual=False)
    assert out3.shape == (8, 8, 16, 16)
    assert jnp.allclose(out3, ref3, **TOL), float(jnp.max(jnp.abs(out3 - ref3)))

    print("KERNEL_OK")
</pallas_src>

<mosaic_0001>
module attributes {stable_mosaic.version = 11 : i64} {
  func.func @kernel(%arg0: i32, %arg1: memref<9x1x256xf32, #tpu.memory_space<vmem>>, %arg2: memref<256x1xf32, #tpu.memory_space<vmem>>, %arg3: memref<1x256xf32, #tpu.memory_space<vmem>>, %arg4: memref<4x256xf32, #tpu.memory_space<vmem>>, %arg5: memref<8x36xbf16, #tpu.memory_space<vmem>>, %arg6: memref<8x1xf32, #tpu.memory_space<vmem>>, %arg7: memref<8x1xf32, #tpu.memory_space<vmem>>, %arg8: memref<8x72xbf16, #tpu.memory_space<vmem>>, %arg9: memref<8x1xf32, #tpu.memory_space<vmem>>, %arg10: memref<8x1xf32, #tpu.memory_space<vmem>>, %arg11: memref<8x256xf32, #tpu.memory_space<vmem>>) attributes {dimension_semantics = [#tpu.dimension_semantics<parallel>], iteration_bounds = array<i64: 2>, scalar_prefetch = 0 : i64, scratch_operands = 0 : i64, tpu.core_type = #tpu.core_type<tc>, window_params = [{pipeline_mode = #tpu.pipeline_mode<synchronous>, transform_indices = @transform_0, window_bounds = array<i64: 9, 1, 256>}, {pipeline_mode = #tpu.pipeline_mode<synchronous>, transform_indices = @transform_1, window_bounds = array<i64: 256, 1>}, {pipeline_mode = #tpu.pipeline_mode<synchronous>, transform_indices = @transform_2, window_bounds = array<i64: 1, 256>}, {transform_indices = @transform_3, window_bounds = array<i64: 4, 256>}, {pipeline_mode = #tpu.pipeline_mode<synchronous>, transform_indices = @transform_4, window_bounds = array<i64: 8, 36>}, {pipeline_mode = #tpu.pipeline_mode<synchronous>, transform_indices = @transform_5, window_bounds = array<i64: 8, 1>}, {pipeline_mode = #tpu.pipeline_mode<synchronous>, transform_indices = @transform_6, window_bounds = array<i64: 8, 1>}, {pipeline_mode = #tpu.pipeline_mode<synchronous>, transform_indices = @transform_7, window_bounds = array<i64: 8, 72>}, {pipeline_mode = #tpu.pipeline_mode<synchronous>, transform_indices = @transform_8, window_bounds = array<i64: 8, 1>}, {pipeline_mode = #tpu.pipeline_mode<synchronous>, transform_indices = @transform_9, window_bounds = array<i64: 8, 1>}, {transform_indices = @transform_10, window_bounds = array<i64: 8, 256>}]} {
    %c0 = arith.constant 0 : index
    %c0_0 = arith.constant 0 : index
    %0 = vector.load %arg2[%c0, %c0_0] : memref<256x1xf32, #tpu.memory_space<vmem>>, vector<256x1xf32>
    %c0_1 = arith.constant 0 : index
    %c0_2 = arith.constant 0 : index
    %1 = vector.load %arg3[%c0_1, %c0_2] : memref<1x256xf32, #tpu.memory_space<vmem>>, vector<1x256xf32>
    %c0_3 = arith.constant 0 : index
    %c0_4 = arith.constant 0 : index
    %2 = vector.load %arg5[%c0_3, %c0_4] : memref<8x36xbf16, #tpu.memory_space<vmem>>, vector<8x36xbf16>
    %c0_5 = arith.constant 0 : index
    %c0_6 = arith.constant 0 : index
    %3 = vector.load %arg8[%c0_5, %c0_6] : memref<8x72xbf16, #tpu.memory_space<vmem>>, vector<8x72xbf16>
    %c0_7 = arith.constant 0 : index
    %c0_8 = arith.constant 0 : index
    %4 = vector.load %arg6[%c0_7, %c0_8] : memref<8x1xf32, #tpu.memory_space<vmem>>, vector<8x1xf32>
    %c0_9 = arith.constant 0 : index
    %c0_10 = arith.constant 0 : index
    %5 = vector.load %arg7[%c0_9, %c0_10] : memref<8x1xf32, #tpu.memory_space<vmem>>, vector<8x1xf32>
    %c0_11 = arith.constant 0 : index
    %c0_12 = arith.constant 0 : index
    %6 = vector.load %arg9[%c0_11, %c0_12] : memref<8x1xf32, #tpu.memory_space<vmem>>, vector<8x1xf32>
    %c0_13 = arith.constant 0 : index
    %c0_14 = arith.constant 0 : index
    %7 = vector.load %arg10[%c0_13, %c0_14] : memref<8x1xf32, #tpu.memory_space<vmem>>, vector<8x1xf32>
    %c0_15 = arith.constant 0 : index
    %c0_16 = arith.constant 0 : index
    %8 = vector.load %arg4[%c0_15, %c0_16] : memref<4x256xf32, #tpu.memory_space<vmem>>, vector<4x256xf32>
    %c17_i32 = arith.constant 17 : i32
    %9 = tpu.dynamic_rotate %8 by %c17_i32 dim 1 : vector<4x256xf32>, i32 -> vector<4x256xf32>
    %c0_17 = arith.constant 0 : index
    %c0_18 = arith.constant 0 : index
    %c0_19 = arith.constant 0 : index
    %10 = vector.load %arg1[%c0_17, %c0_18, %c0_19] : memref<9x1x256xf32, #tpu.memory_space<vmem>>, vector<1x1x256xf32>
    %11 = vector.shape_cast %10 : vector<1x1x256xf32> to vector<1x256xf32>
    %12 = vector.broadcast %11 : vector<1x256xf32> to vector<4x256xf32>
    %13 = arith.mulf %9, %12 : vector<4x256xf32>
    %c16_i32 = arith.constant 16 : i32
    %14 = tpu.dynamic_rotate %8 by %c16_i32 dim 1 : vector<4x256xf32>, i32 -> vector<4x256xf32>
    %c1 = arith.constant 1 : index
    %c0_20 = arith.constant 0 : index
    %c0_21 = arith.constant 0 : index
    %15 = vector.load %arg1[%c1, %c0_20, %c0_21] : memref<9x1x256xf32, #tpu.memory_space<vmem>>, vector<1x1x256xf32>
    %16 = vector.shape_cast %15 : vector<1x1x256xf32> to vector<1x256xf32>
    %17 = vector.broadcast %16 : vector<1x256xf32> to vector<4x256xf32>
    %18 = arith.mulf %14, %17 : vector<4x256xf32>
    %c15_i32 = arith.constant 15 : i32
    %19 = tpu.dynamic_rotate %8 by %c15_i32 dim 1 : vector<4x256xf32>, i32 -> vector<4x256xf32>
    %c2 = arith.constant 2 : index
    %c0_22 = arith.constant 0 : index
    %c0_23 = arith.constant 0 : index
    %20 = vector.load %arg1[%c2, %c0_22, %c0_23] : memref<9x1x256xf32, #tpu.memory_space<vmem>>, vector<1x1x256xf32>
    %21 = vector.shape_cast %20 : vector<1x1x256xf32> to vector<1x256xf32>
    %22 = vector.broadcast %21 : vector<1x256xf32> to vector<4x256xf32>
    %23 = arith.mulf %19, %22 : vector<4x256xf32>
    %c1_i32 = arith.constant 1 : i32
    %24 = tpu.dynamic_rotate %8 by %c1_i32 dim 1 : vector<4x256xf32>, i32 -> vector<4x256xf32>
    %c3 = arith.constant 3 : index
    %c0_24 = arith.constant 0 : index
    %c0_25 = arith.constant 0 : index
    %25 = vector.load %arg1[%c3, %c0_24, %c0_25] : memref<9x1x256xf32, #tpu.memory_space<vmem>>, vector<1x1x256xf32>
    %26 = vector.shape_cast %25 : vector<1x1x256xf32> to vector<1x256xf32>
    %27 = vector.broadcast %26 : vector<1x256xf32> to vector<4x256xf32>
    %28 = arith.mulf %24, %27 : vector<4x256xf32>
    %c255_i32 = arith.constant 255 : i32
    %29 = tpu.dynamic_rotate %8 by %c255_i32 dim 1 : vector<4x256xf32>, i32 -> vector<4x256xf32>
    %c5 = arith.constant 5 : index
    %c0_26 = arith.constant 0 : index
    %c0_27 = arith.constant 0 : index
    %30 = vector.load %arg1[%c5, %c0_26, %c0_27] : memref<9x1x256xf32, #tpu.memory_space<vmem>>, vector<1x1x256xf32>
    %31 = vector.shape_cast %30 : vector<1x1x256xf32> to vector<1x256xf32>
    %32 = vector.broadcast %31 : vector<1x256xf32> to vector<4x256xf32>
    %33 = arith.mulf %29, %32 : vector<4x256xf32>
    %c241_i32 = arith.constant 241 : i32
    %34 = tpu.dynamic_rotate %8 by %c241_i32 dim 1 : vector<4x256xf32>, i32 -> vector<4x256xf32>
    %c6 = arith.constant 6 : index
    %c0_28 = arith.constant 0 : index
    %c0_29 = arith.constant 0 : index
    %35 = vector.load %arg1[%c6, %c0_28, %c0_29] : memref<9x1x256xf32, #tpu.memory_space<vmem>>, vector<1x1x256xf32>
    %36 = vector.shape_cast %35 : vector<1x1x256xf32> to vector<1x256xf32>
    %37 = vector.broadcast %36 : vector<1x256xf32> to vector<4x256xf32>
    %38 = arith.mulf %34, %37 : vector<4x256xf32>
    %c240_i32 = arith.constant 240 : i32
    %39 = tpu.dynamic_rotate %8 by %c240_i32 dim 1 : vector<4x256xf32>, i32 -> vector<4x256xf32>
    %c7 = arith.constant 7 : index
    %c0_30 = arith.constant 0 : index
    %c0_31 = arith.constant 0 : index
    %40 = vector.load %arg1[%c7, %c0_30, %c0_31] : memref<9x1x256xf32, #tpu.memory_space<vmem>>, vector<1x1x256xf32>
    %41 = vector.shape_cast %40 : vector<1x1x256xf32> to vector<1x256xf32>
    %42 = vector.broadcast %41 : vector<1x256xf32> to vector<4x256xf32>
    %43 = arith.mulf %39, %42 : vector<4x256xf32>
    %c239_i32 = arith.constant 239 : i32
    %44 = tpu.dynamic_rotate %8 by %c239_i32 dim 1 : vector<4x256xf32>, i32 -> vector<4x256xf32>
    %c8 = arith.constant 8 : index
    %c0_32 = arith.constant 0 : index
    %c0_33 = arith.constant 0 : index
    %45 = vector.load %arg1[%c8, %c0_32, %c0_33] : memref<9x1x256xf32, #tpu.memory_space<vmem>>, vector<1x1x256xf32>
    %46 = vector.shape_cast %45 : vector<1x1x256xf32> to vector<1x256xf32>
    %47 = vector.broadcast %46 : vector<1x256xf32> to vector<4x256xf32>
    %48 = arith.mulf %44, %47 : vector<4x256xf32>
    %49 = tpu.concatenate %13, %18, %23, %28, %8, %33, %38, %43, %48 in 0 : vector<4x256xf32>, vector<4x256xf32>, vector<4x256xf32>, vector<4x256xf32>, vector<4x256xf32>, vector<4x256xf32>, vector<4x256xf32>, vector<4x256xf32>, vector<4x256xf32> -> vector<36x256xf32>
    %50 = arith.truncf %49 : vector<36x256xf32> to vector<36x256xbf16>
    %cst = arith.constant dense<0.000000e+00> : vector<8x256xf32>
    %51 = tpu.matmul %2, %50, %cst {dimension_numbers = #tpu.dot_dimension_numbers<[1], [0], [0], [1], [0, 0, 1, 1], [], []>} : vector<8x36xbf16>, vector<36x256xbf16>, vector<8x256xf32> -> vector<8x256xf32>
    %cst_34 = arith.constant dense<0.000000e+00> : vector<256xf32>
    %52 = vector.multi_reduction <add>, %51, %cst_34 [0] : vector<8x256xf32> to vector<256xf32>
    %53 = vector.shape_cast %52 : vector<256xf32> to vector<1x256xf32>
    %54 = arith.mulf %51, %51 : vector<8x256xf32>
    %cst_35 = arith.constant dense<0.000000e+00> : vector<256xf32>
    %55 = vector.multi_reduction <add>, %54, %cst_35 [0] : vector<8x256xf32> to vector<256xf32>
    %56 = vector.shape_cast %55 : vector<256xf32> to vector<1x256xf32>
    %cst_36 = arith.constant dense<0.000000e+00> : vector<1x1xf32>
    %57 = tpu.matmul %53, %0, %cst_36 {dimension_numbers = #tpu.dot_dimension_numbers<[1], [0], [0], [1], [0, 0, 1, 1], [], []>} : vector<1x256xf32>, vector<256x1xf32>, vector<1x1xf32> -> vector<1x1xf32>
    %cst_37 = arith.constant dense<0.000000e+00> : vector<1x1xf32>
    %58 = tpu.matmul %56, %0, %cst_37 {dimension_numbers = #tpu.dot_dimension_numbers<[1], [0], [0], [1], [0, 0, 1, 1], [], []>} : vector<1x256xf32>, vector<256x1xf32>, vector<1x1xf32> -> vector<1x1xf32>
    %cst_38 = arith.constant 4.8828125E-4 : f32
    %59 = vector.broadcast %cst_38 : f32 to vector<1x1xf32>
    %60 = arith.mulf %57, %59 : vector<1x1xf32>
    %cst_39 = arith.constant 4.8828125E-4 : f32
    %61 = vector.broadcast %cst_39 : f32 to vector<1x1xf32>
    %62 = arith.mulf %58, %61 : vector<1x1xf32>
    %63 = arith.mulf %60, %60 : vector<1x1xf32>
    %64 = arith.subf %62, %63 : vector<1x1xf32>
    %cst_40 = arith.constant 0.000000e+00 : f32
    %65 = vector.broadcast %cst_40 : f32 to vector<1x1xf32>
    %66 = arith.maximumf %64, %65 : vector<1x1xf32>
    %cst_41 = arith.constant 9.99999974E-6 : f32
    %67 = vector.broadcast %cst_41 : f32 to vector<1x1xf32>
    %68 = arith.addf %66, %67 : vector<1x1xf32>
    %69 = math.rsqrt %68 : vector<1x1xf32>
    %cst_42 = arith.constant dense<0.000000e+00> : vector<1x256xf32>
    %70 = tpu.matmul %60, %1, %cst_42 {dimension_numbers = #tpu.dot_dimension_numbers<[1], [0], [0], [1], [0, 0, 1, 1], [], []>} : vector<1x1xf32>, vector<1x256xf32>, vector<1x256xf32> -> vector<1x256xf32>
    %cst_43 = arith.constant dense<0.000000e+00> : vector<1x256xf32>
    %71 = tpu.matmul %69, %1, %cst_43 {dimension_numbers = #tpu.dot_dimension_numbers<[1], [0], [0], [1], [0, 0, 1, 1], [], []>} : vector<1x1xf32>, vector<1x256xf32>, vector<1x256xf32> -> vector<1x256xf32>
    %72 = vector.broadcast %70 : vector<1x256xf32> to vector<8x256xf32>
    %73 = arith.subf %51, %72 : vector<8x256xf32>
    %74 = vector.broadcast %71 : vector<1x256xf32> to vector<8x256xf32>
    %75 = arith.mulf %73, %74 : vector<8x256xf32>
    %76 = vector.broadcast %4 : vector<8x1xf32> to vector<8x256xf32>
    %77 = arith.mulf %75, %76 : vector<8x256xf32>
    %78 = vector.broadcast %5 : vector<8x1xf32> to vector<8x256xf32>
    %79 = arith.addf %77, %78 : vector<8x256xf32>
    %cst_44 = arith.constant 5.000000e-01 : f32
    %80 = vector.broadcast %cst_44 : f32 to vector<8x256xf32>
    %81 = arith.mulf %80, %79 : vector<8x256xf32>
    %cst_45 = arith.constant 0.707106769 : f32
    %82 = vector.broadcast %cst_45 : f32 to vector<8x256xf32>
    %83 = arith.mulf %79, %82 : vector<8x256xf32>
    %84 = math.absf %83 : vector<8x256xf32>
    %cst_46 = arith.constant 0.327591091 : f32
    %85 = vector.broadcast %cst_46 : f32 to vector<8x256xf32>
    %86 = arith.mulf %85, %84 : vector<8x256xf32>
    %cst_47 = arith.constant 1.000000e+00 : f32
    %87 = vector.broadcast %cst_47 : f32 to vector<8x256xf32>
    %88 = arith.addf %87, %86 : vector<8x256xf32>
    %cst_48 = arith.constant 1.000000e+00 : f32
    %89 = vector.broadcast %cst_48 : f32 to vector<8x256xf32>
    %90 = arith.divf %89, %88 : vector<8x256xf32>
    %cst_49 = arith.constant 1.06140542 : f32
    %91 = vector.broadcast %cst_49 : f32 to vector<8x256xf32>
    %92 = arith.mulf %91, %90 : vector<8x256xf32>
    %cst_50 = arith.constant -1.45315206 : f32
    %93 = vector.broadcast %cst_50 : f32 to vector<8x256xf32>
    %94 = arith.addf %92, %93 : vector<8x256xf32>
    %95 = arith.mulf %94, %90 : vector<8x256xf32>
    %cst_51 = arith.constant 1.42141378 : f32
    %96 = vector.broadcast %cst_51 : f32 to vector<8x256xf32>
    %97 = arith.addf %95, %96 : vector<8x256xf32>
    %98 = arith.mulf %97, %90 : vector<8x256xf32>
    %cst_52 = arith.constant -0.284496725 : f32
    %99 = vector.broadcast %cst_52 : f32 to vector<8x256xf32>
    %100 = arith.addf %98, %99 : vector<8x256xf32>
    %101 = arith.mulf %100, %90 : vector<8x256xf32>
    %cst_53 = arith.constant 0.254829586 : f32
    %102 = vector.broadcast %cst_53 : f32 to vector<8x256xf32>
    %103 = arith.addf %101, %102 : vector<8x256xf32>
    %104 = arith.mulf %103, %90 : vector<8x256xf32>
    %cst_54 = arith.constant 0.000000e+00 : f32
    %105 = vector.broadcast %cst_54 : f32 to vector<8x256xf32>
    %106 = arith.subf %105, %84 : vector<8x256xf32>
    %107 = arith.mulf %106, %84 : vector<8x256xf32>
    %108 = math.exp %107 : vector<8x256xf32>
    %109 = arith.mulf %104, %108 : vector<8x256xf32>
    %cst_55 = arith.constant 1.000000e+00 : f32
    %110 = vector.broadcast %cst_55 : f32 to vector<8x256xf32>
    %111 = arith.subf %110, %109 : vector<8x256xf32>
    %cst_56 = arith.constant 0.000000e+00 : f32
    %112 = vector.broadcast %cst_56 : f32 to vector<8x256xf32>
    %113 = arith.cmpf oge, %83, %112 : vector<8x256xf32>
    %cst_57 = arith.constant 0.000000e+00 : f32
    %114 = vector.broadcast %cst_57 : f32 to vector<8x256xf32>
    %115 = arith.subf %114, %111 : vector<8x256xf32>
    %116 = arith.select %113, %111, %115 : vector<8x256xi1>, vector<8x256xf32>
    %cst_58 = arith.constant 1.000000e+00 : f32
    %117 = vector.broadcast %cst_58 : f32 to vector<8x256xf32>
    %118 = arith.addf %117, %116 : vector<8x256xf32>
    %119 = arith.mulf %81, %118 : vector<8x256xf32>
    %c17_i32_59 = arith.constant 17 : i32
    %120 = tpu.dynamic_rotate %119 by %c17_i32_59 dim 1 : vector<8x256xf32>, i32 -> vector<8x256xf32>
    %c0_60 = arith.constant 0 : index
    %c0_61 = arith.constant 0 : index
    %c0_62 = arith.constant 0 : index
    %121 = vector.load %arg1[%c0_60, %c0_61, %c0_62] : memref<9x1x256xf32, #tpu.memory_space<vmem>>, vector<1x1x256xf32>
    %122 = vector.shape_cast %121 : vector<1x1x256xf32> to vector<1x256xf32>
    %123 = vector.broadcast %122 : vector<1x256xf32> to vector<8x256xf32>
    %124 = arith.mulf %120, %123 : vector<8x256xf32>
    %c16_i32_63 = arith.constant 16 : i32
    %125 = tpu.dynamic_rotate %119 by %c16_i32_63 dim 1 : vector<8x256xf32>, i32 -> vector<8x256xf32>
    %c1_64 = arith.constant 1 : index
    %c0_65 = arith.constant 0 : index
    %c0_66 = arith.constant 0 : index
    %126 = vector.load %arg1[%c1_64, %c0_65, %c0_66] : memref<9x1x256xf32, #tpu.memory_space<vmem>>, vector<1x1x256xf32>
    %127 = vector.shape_cast %126 : vector<1x1x256xf32> to vector<1x256xf32>
    %128 = vector.broadcast %127 : vector<1x256xf32> to vector<8x256xf32>
    %129 = arith.mulf %125, %128 : vector<8x256xf32>
    %c15_i32_67 = arith.constant 15 : i32
    %130 = tpu.dynamic_rotate %119 by %c15_i32_67 dim 1 : vector<8x256xf32>, i32 -> vector<8x256xf32>
    %c2_68 = arith.constant 2 : index
    %c0_69 = arith.constant 0 : index
    %c0_70 = arith.constant 0 : index
    %131 = vector.load %arg1[%c2_68, %c0_69, %c0_70] : memref<9x1x256xf32, #tpu.memory_space<vmem>>, vector<1x1x256xf32>
    %132 = vector.shape_cast %131 : vector<1x1x256xf32> to vector<1x256xf32>
    %133 = vector.broadcast %132 : vector<1x256xf32> to vector<8x256xf32>
    %134 = arith.mulf %130, %133 : vector<8x256xf32>
    %c1_i32_71 = arith.constant 1 : i32
    %135 = tpu.dynamic_rotate %119 by %c1_i32_71 dim 1 : vector<8x256xf32>, i32 -> vector<8x256xf32>
    %c3_72 = arith.constant 3 : index
    %c0_73 = arith.constant 0 : index
    %c0_74 = arith.constant 0 : index
    %136 = vector.load %arg1[%c3_72, %c0_73, %c0_74] : memref<9x1x256xf32, #tpu.memory_space<vmem>>, vector<1x1x256xf32>
    %137 = vector.shape_cast %136 : vector<1x1x256xf32> to vector<1x256xf32>
    %138 = vector.broadcast %137 : vector<1x256xf32> to vector<8x256xf32>
    %139 = arith.mulf %135, %138 : vector<8x256xf32>
    %c255_i32_75 = arith.constant 255 : i32
    %140 = tpu.dynamic_rotate %119 by %c255_i32_75 dim 1 : vector<8x256xf32>, i32 -> vector<8x256xf32>
    %c5_76 = arith.constant 5 : index
    %c0_77 = arith.constant 0 : index
    %c0_78 = arith.constant 0 : index
    %141 = vector.load %arg1[%c5_76, %c0_77, %c0_78] : memref<9x1x256xf32, #tpu.memory_space<vmem>>, vector<1x1x256xf32>
    %142 = vector.shape_cast %141 : vector<1x1x256xf32> to vector<1x256xf32>
    %143 = vector.broadcast %142 : vector<1x256xf32> to vector<8x256xf32>
    %144 = arith.mulf %140, %143 : vector<8x256xf32>
    %c241_i32_79 = arith.constant 241 : i32
    %145 = tpu.dynamic_rotate %119 by %c241_i32_79 dim 1 : vector<8x256xf32>, i32 -> vector<8x256xf32>
    %c6_80 = arith.constant 6 : index
    %c0_81 = arith.constant 0 : index
    %c0_82 = arith.constant 0 : index
    %146 = vector.load %arg1[%c6_80, %c0_81, %c0_82] : memref<9x1x256xf32, #tpu.memory_space<vmem>>, vector<1x1x256xf32>
    %147 = vector.shape_cast %146 : vector<1x1x256xf32> to vector<1x256xf32>
    %148 = vector.broadcast %147 : vector<1x256xf32> to vector<8x256xf32>
    %149 = arith.mulf %145, %148 : vector<8x256xf32>
    %c240_i32_83 = arith.constant 240 : i32
    %150 = tpu.dynamic_rotate %119 by %c240_i32_83 dim 1 : vector<8x256xf32>, i32 -> vector<8x256xf32>
    %c7_84 = arith.constant 7 : index
    %c0_85 = arith.constant 0 : index
    %c0_86 = arith.constant 0 : index
    %151 = vector.load %arg1[%c7_84, %c0_85, %c0_86] : memref<9x1x256xf32, #tpu.memory_space<vmem>>, vector<1x1x256xf32>
    %152 = vector.shape_cast %151 : vector<1x1x256xf32> to vector<1x256xf32>
    %153 = vector.broadcast %152 : vector<1x256xf32> to vector<8x256xf32>
    %154 = arith.mulf %150, %153 : vector<8x256xf32>
    %c239_i32_87 = arith.constant 239 : i32
    %155 = tpu.dynamic_rotate %119 by %c239_i32_87 dim 1 : vector<8x256xf32>, i32 -> vector<8x256xf32>
    %c8_88 = arith.constant 8 : index
    %c0_89 = arith.constant 0 : index
    %c0_90 = arith.constant 0 : index
    %156 = vector.load %arg1[%c8_88, %c0_89, %c0_90] : memref<9x1x256xf32, #tpu.memory_space<vmem>>, vector<1x1x256xf32>
    %157 = vector.shape_cast %156 : vector<1x1x256xf32> to vector<1x256xf32>
    %158 = vector.broadcast %157 : vector<1x256xf32> to vector<8x256xf32>
    %159 = arith.mulf %155, %158 : vector<8x256xf32>
    %160 = tpu.concatenate %124, %129, %134, %139, %119, %144, %149, %154, %159 in 0 : vector<8x256xf32>, vector<8x256xf32>, vector<8x256xf32>, vector<8x256xf32>, vector<8x256xf32>, vector<8x256xf32>, vector<8x256xf32>, vector<8x256xf32>, vector<8x256xf32> -> vector<72x256xf32>
    %161 = arith.truncf %160 : vector<72x256xf32> to vector<72x256xbf16>
    %cst_91 = arith.constant dense<0.000000e+00> : vector<8x256xf32>
    %162 = tpu.matmul %3, %161, %cst_91 {dimension_numbers = #tpu.dot_dimension_numbers<[1], [0], [0], [1], [0, 0, 1, 1], [], []>} : vector<8x72xbf16>, vector<72x256xbf16>, vector<8x256xf32> -> vector<8x256xf32>
    %cst_92 = arith.constant dense<0.000000e+00> : vector<256xf32>
    %163 = vector.multi_reduction <add>, %162, %cst_92 [0] : vector<8x256xf32> to vector<256xf32>
    %164 = vector.shape_cast %163 : vector<256xf32> to vector<1x256xf32>
    %165 = arith.mulf %162, %162 : vector<8x256xf32>
    %cst_93 = arith.constant dense<0.000000e+00> : vector<256xf32>
    %166 = vector.multi_reduction <add>, %165, %cst_93 [0] : vector<8x256xf32> to vector<256xf32>
    %167 = vector.shape_cast %166 : vector<256xf32> to vector<1x256xf32>
    %cst_94 = arith.constant dense<0.000000e+00> : vector<1x1xf32>
    %168 = tpu.matmul %164, %0, %cst_94 {dimension_numbers = #tpu.dot_dimension_numbers<[1], [0], [0], [1], [0, 0, 1, 1], [], []>} : vector<1x256xf32>, vector<256x1xf32>, vector<1x1xf32> -> vector<1x1xf32>
    %cst_95 = arith.constant dense<0.000000e+00> : vector<1x1xf32>
    %169 = tpu.matmul %167, %0, %cst_95 {dimension_numbers = #tpu.dot_dimension_numbers<[1], [0], [0], [1], [0, 0, 1, 1], [], []>} : vector<1x256xf32>, vector<256x1xf32>, vector<1x1xf32> -> vector<1x1xf32>
    %cst_96 = arith.constant 4.8828125E-4 : f32
    %170 = vector.broadcast %cst_96 : f32 to vector<1x1xf32>
    %171 = arith.mulf %168, %170 : vector<1x1xf32>
    %cst_97 = arith.constant 4.8828125E-4 : f32
    %172 = vector.broadcast %cst_97 : f32 to vector<1x1xf32>
    %173 = arith.mulf %169, %172 : vector<1x1xf32>
    %174 = arith.mulf %171, %171 : vector<1x1xf32>
    %175 = arith.subf %173, %174 : vector<1x1xf32>
    %cst_98 = arith.constant 0.000000e+00 : f32
    %176 = vector.broadcast %cst_98 : f32 to vector<1x1xf32>
    %177 = arith.maximumf %175, %176 : vector<1x1xf32>
    %cst_99 = arith.constant 9.99999974E-6 : f32
    %178 = vector.broadcast %cst_99 : f32 to vector<1x1xf32>
    %179 = arith.addf %177, %178 : vector<1x1xf32>
    %180 = math.rsqrt %179 : vector<1x1xf32>
    %cst_100 = arith.constant dense<0.000000e+00> : vector<1x256xf32>
    %181 = tpu.matmul %171, %1, %cst_100 {dimension_numbers = #tpu.dot_dimension_numbers<[1], [0], [0], [1], [0, 0, 1, 1], [], []>} : vector<1x1xf32>, vector<1x256xf32>, vector<1x256xf32> -> vector<1x256xf32>
    %cst_101 = arith.constant dense<0.000000e+00> : vector<1x256xf32>
    %182 = tpu.matmul %180, %1, %cst_101 {dimension_numbers = #tpu.dot_dimension_numbers<[1], [0], [0], [1], [0, 0, 1, 1], [], []>} : vector<1x1xf32>, vector<1x256xf32>, vector<1x256xf32> -> vector<1x256xf32>
    %183 = vector.broadcast %181 : vector<1x256xf32> to vector<8x256xf32>
    %184 = arith.subf %162, %183 : vector<8x256xf32>
    %185 = vector.broadcast %182 : vector<1x256xf32> to vector<8x256xf32>
    %186 = arith.mulf %184, %185 : vector<8x256xf32>
    %187 = vector.broadcast %6 : vector<8x1xf32> to vector<8x256xf32>
    %188 = arith.mulf %186, %187 : vector<8x256xf32>
    %189 = vector.broadcast %7 : vector<8x1xf32> to vector<8x256xf32>
    %190 = arith.addf %188, %189 : vector<8x256xf32>
    %c0_102 = arith.constant 0 : index
    %c0_103 = arith.constant 0 : index
    %191 = vector.load %arg11[%c0_102, %c0_103] : memref<8x256xf32, #tpu.memory_space<vmem>>, vector<8x256xf32>
    tpu.vector_store %arg11[%c0_102, %c0_103], %190 {strides = array<i32>} : memref<8x256xf32, #tpu.memory_space<vmem>>, vector<8x256xf32>,
    return
  }
  func.func @transform_0(%arg0: i32) -> (i32, i32, i32) {
    %c0_i32 = arith.constant 0 : i32
    %c0_i32_0 = arith.constant 0 : i32
    %c0_i32_1 = arith.constant 0 : i32
    %c0_i32_2 = arith.constant 0 : i32
    return %c0_i32, %c0_i32_0, %c0_i32_1 : i32, i32, i32
  }
  func.func @transform_1(%arg0: i32) -> (i32, i32) {
    %c0_i32 = arith.constant 0 : i32
    %c0_i32_0 = arith.constant 0 : i32
    %c0_i32_1 = arith.constant 0 : i32
    return %c0_i32, %c0_i32_0 : i32, i32
  }
  func.func @transform_2(%arg0: i32) -> (i32, i32) {
    %c0_i32 = arith.constant 0 : i32
    %c0_i32_0 = arith.constant 0 : i32
    %c0_i32_1 = arith.constant 0 : i32
    return %c0_i32, %c0_i32_0 : i32, i32
  }
  func.func @transform_3(%arg0: i32) -> (i32, i32) {
    %c0_i32 = arith.constant 0 : i32
    %c0_i32_0 = arith.constant 0 : i32
    return %c0_i32, %arg0 : i32, i32
  }
  func.func @transform_4(%arg0: i32) -> (i32, i32) {
    %c0_i32 = arith.constant 0 : i32
    %c0_i32_0 = arith.constant 0 : i32
    %c0_i32_1 = arith.constant 0 : i32
    return %c0_i32, %c0_i32_0 : i32, i32
  }
  func.func @transform_5(%arg0: i32) -> (i32, i32) {
    %c0_i32 = arith.constant 0 : i32
    %c0_i32_0 = arith.constant 0 : i32
    %c0_i32_1 = arith.constant 0 : i32
    return %c0_i32, %c0_i32_0 : i32, i32
  }
  func.func @transform_6(%arg0: i32) -> (i32, i32) {
    %c0_i32 = arith.constant 0 : i32
    %c0_i32_0 = arith.constant 0 : i32
    %c0_i32_1 = arith.constant 0 : i32
    return %c0_i32, %c0_i32_0 : i32, i32
  }
  func.func @transform_7(%arg0: i32) -> (i32, i32) {
    %c0_i32 = arith.constant 0 : i32
    %c0_i32_0 = arith.constant 0 : i32
    %c0_i32_1 = arith.constant 0 : i32
    return %c0_i32, %c0_i32_0 : i32, i32
  }
  func.func @transform_8(%arg0: i32) -> (i32, i32) {
    %c0_i32 = arith.constant 0 : i32
    %c0_i32_0 = arith.constant 0 : i32
    %c0_i32_1 = arith.constant 0 : i32
    return %c0_i32, %c0_i32_0 : i32, i32
  }
  func.func @transform_9(%arg0: i32) -> (i32, i32) {
    %c0_i32 = arith.constant 0 : i32
    %c0_i32_0 = arith.constant 0 : i32
    %c0_i32_1 = arith.constant 0 : i32
    return %c0_i32, %c0_i32_0 : i32, i32
  }
  func.func @transform_10(%arg0: i32) -> (i32, i32) {
    %c0_i32 = arith.constant 0 : i32
    %c0_i32_0 = arith.constant 0 : i32
    return %c0_i32, %arg0 : i32, i32
  }
}

</mosaic_0001>

<bundles_post_ra>
// kernel: double_conv.1
= control target key start
LH: loop header
LB: loop body
LE: loop exit
PB: predicated region body
PF: predicated region fallthrough
CT: control target
= control target key end

     0   :  { %s1917_s13 = smov 0   ;;  %s2562_s0 = inlined_call_operand.vmem [shape: f32[9,1,256], index: 0, kind: input, shape index: {}]   ;;  %s2563_s1 = inlined_call_operand.vmem [shape: f32[256,1], index: 1, kind: input, shape index: {}]   ;;  %s2564_s2 = inlined_call_operand.vmem [shape: f32[1,256], index: 2, kind: input, shape index: {}]   ;;  %s2565_s3 = inlined_call_operand.vmem [shape: f32[4,512], index: 3, kind: input, shape index: {}]   ;;  %s2566_s4 = inlined_call_operand.vmem [shape: bf16[8,36], index: 4, kind: input, shape index: {}]   ;;  %s2567_s5 = inlined_call_operand.vmem [shape: f32[8,1], index: 5, kind: input, shape index: {}]   ;;  %s2568_s6 = inlined_call_operand.vmem [shape: f32[8,1], index: 6, kind: input, shape index: {}]   ;;  %s2569_s7 = inlined_call_operand.vmem [shape: bf16[8,72], index: 7, kind: input, shape index: {}]   ;;  %s2570_s8 = inlined_call_operand.vmem [shape: f32[8,1], index: 8, kind: input, shape index: {}]   ;;  %s2571_s9 = inlined_call_operand.vmem [shape: f32[8,1], index: 9, kind: input, shape index: {}]   ;;  %s2572_s10 = inlined_call_operand.vmem [shape: f32[8,512], index: 10, kind: output, shape index: {}]  }
   0x1 LB: > { %s1637_s14 = sadd.s32 4294967295, %s1850_s13   ;;  %p1641_p0 = scmp.ge.s32.totalorder %s1850_s13, 1  ;;  %s1850_s13 = sphi %s1917_s13, %s20_s13  }
   0x2   : > { %p313_p1 = scmp.lt.s32.totalorder %s1850_s13, 3 }
   0x4   : > { %p314_p2 = pnand %p1641_p0, %p313_p1 }
   0x6   : > { %317 = sbr.rel (%p314_p2) target bundleno = 1639 (0x667), region = 60 }
   0xb   : > { %s1642_s15 = sshll.u32 %s1637_s14, 1  ;;  %s1852_s20 = smov 127   ;;  %v2573_v2 = vmov 0   ;;  %v1970_v3 = vld [vmem:[%s2563_s1 + $0xf8] sm:$0xff]  ;;  %v1982_v5 = vld [vmem:[%s2563_s1 + $0xf0] sm:$0xff]  ;;  %v1997_v7 = vld [vmem:[%s2563_s1 + $0xe8] sm:$0xff]  ;;  %v411_v19 = vlaneseq }
   0xc   : > { %p352_p3 = scmp.lt.s32.totalorder %s1642_s15, 3  ;;  %s1853_s21 = smov 111   ;;  %666 = vmatprep.mubr.bf16.mxu0 %v2573_v2  ;;  %1829 = vset.pattern.permute.xlu0 %v2573_v2  ;;  %v1975_v4 = vld [vmem:[%s2563_s1 + $0x78] sm:$0xff]  ;;  %v1988_v6 = vld [vmem:[%s2563_s1 + $0x70] sm:$0xff]  ;;  %v2003_v8 = vld [vmem:[%s2563_s1 + $0x68] sm:$0xff]  ;;  %vm627_vm4 = vcmask 1041408  }
   0xd   : > { %s1854_s22 = smov 112   ;;  %s1855_s23 = smov 113   ;;  %1830 = vset.pattern.permute.xlu1 %v2573_v2  ;;  %1671 = vmatprep.subr.mxu1 %v1970_v3  ;;  %v2009_v9 = vld [vmem:[%s2563_s1 + $0xe0] sm:$0xff]  ;;  %v2021_v11 = vld [vmem:[%s2563_s1 + $0xd8] sm:$0xff]  ;;  %v2033_v13 = vld [vmem:[%s2563_s1 + $0xd0] sm:$0xff]  ;;  %v419_v20 = vshrl.u32 %v411_v19, 7 }
   0xe   : > { %s2629_s15 = smov (!%p352_p3, %s1642_s15), 3  ;;  %s1856_s24 = smov 16   ;;  %1672 = vmatpush3.msra.mxu1 %v1975_v4  ;;  %v2015_v10 = vld [vmem:[%s2563_s1 + $0x60] sm:$0xff]  ;;  %v2027_v12 = vld [vmem:[%s2563_s1 + $0x58] sm:$0xff]  ;;  %v2039_v14 = vld [vmem:[%s2563_s1 + $0x50] sm:$0xff]  ;;  %v2068_v21 = vand.u32 127, %v411_v19 }
   0xf   : > { %s1643_s16 = sshll.u32 %s2629_s15, 2  ;;  %s1857_s25 = smov 1   ;;  %1673 = vmatprep.subr.mxu1 %v1982_v5  ;;  %v2045_v15 = vld [vmem:[%s2563_s1 + $0xc8] sm:$0xff]  ;;  %v2057_v17 = vld [vmem:[%s2563_s1 + $0xc0] sm:$0xff]  ;;  %v2070_v24 = vsub.s32 0, %v419_v20  ;;  %v2072_v25 = vsub.s32 1, %v419_v20 }
  0x10   : > { %s355_s19 = scalar_lea.vmem %s2565_s3, %s1643_s16  ;;  %s1859_s26 = smov 17   ;;  %1674 = vmatpush3.msra.mxu1 %v1988_v6  ;;  %v2051_v16 = vld [vmem:[%s2563_s1 + $0x48] sm:$0xff]  ;;  %v2063_v18 = vld [vmem:[%s2563_s1 + $0x40] sm:$0xff]  ;;  %vm500_vm0 = vcmp.lt.s32.totalorder %v2068_v21, 127  ;;  %v1652_v28 = vld [vmem:[%s2562_s0 + $0x10] sm:$0x3] }
  0x11   : > { %v1931_v0 = vld [vmem:[%s355_s19] sm:$0xff]  ;;  %s1860_s17 = smov 15   ;;  %1675 = vmatprep.subr.mxu1 %v1997_v7  ;;  %2594 = vst [vmem:[#allocation2_spill] sm:$0xff] %v2070_v24  ;;  %v1649_v26 = vld [vmem:[%s2562_s0 + $0xa] sm:$0x3]  ;;  %vm544_vm1 = vcmp.lt.s32.totalorder %v2068_v21, 112  ;;  %v2106_v38 = vrot.slane %v1652_v28, %v2070_v24  ;;  %v2109_v39 = vrot.slane %v1652_v28, %v2072_v25 }
  0x12   : > { %496 = vrot.lane.b32.xlu1 %v1931_v0, %s1852_s20  ;;  %562 = vrot.lane.b32.xlu0 %v1931_v0, %s1853_s21  ;;  %v1939_v1 = vcombine.high %v1931_v0, %v1931_v0  ;;  %v1651_v27 = vld [vmem:[%s2562_s0 + $0xe] sm:$0x3]  ;;  %v2085_v30 = vrot.slane %v1649_v26, %v2070_v24  ;;  %v2088_v31 = vrot.slane %v1649_v26, %v2072_v25  ;;  %vm566_vm2 = vcmp.lt.s32.totalorder %v2068_v21, 111  ;;  %v1650_v35 = vld [vmem:[%s2562_s0 + $0xc] sm:$0x3] }
  0x13   : > { %1676 = vmatpush3.msra.mxu1 %v2003_v8  ;;  %v2100_v36 = vrot.slane %v1651_v27, %v2070_v24  ;;  %v2103_v37 = vrot.slane %v1651_v27, %v2072_v25  ;;  %vm522_vm3 = vcmp.lt.s32.totalorder %v2068_v21, 113  ;;  %v2115_v44 = vrot.slane %v1650_v35, %v2070_v24 }
  0x14   : > { %1677 = vmatprep.subr.mxu1 %v2009_v9  ;;  %2595 = vst [vmem:[#allocation3_spill] sm:$0xff] %v2085_v30  ;;  %2596 = vst [vmem:[#allocation4_spill] sm:$0xff] %v2088_v31  ;;  %v2118_v45 = vrot.slane %v1650_v35, %v2072_v25  ;;  %vm608_vm5 = vcmask 1043456   ;;  %v1646_v35 = vld [vmem:[%s2562_s0 + $0x2] sm:$0x3]  ;;  %vm434_vm6 = vcmp.lt.s32.totalorder %v2068_v21, 16 }
  0x15   : > { %1678 = vmatpush3.msra.mxu1 %v2015_v10  ;;  %2597 = vst [vmem:[#allocation5_spill] sm:$0xff] %v2100_v36  ;;  %2598 = vst [vmem:[#allocation6_spill] sm:$0xff] %v2103_v37  ;;  %vm478_vm7 = vcmp.lt.s32.totalorder %v2068_v21, 1  ;;  %vm413_vm8 = vcmp.lt.s32.totalorder %v2068_v21, 17  ;;  %vm456_vm9 = vcmp.lt.s32.totalorder %v2068_v21, 15  ;;  %vm623_vm10 = vcmask 293888  }
  0x16   : > { %540 = vrot.lane.b32.xlu0 %v1931_v0, %s1854_s22  ;;  %498 = vrot.lane.b32.xlu1 %v1939_v1, %s1852_s20  ;;  %2599 = vst [vmem:[#allocation7_spill] sm:$0xff] %v2118_v45  ;;  %vm861_vm11 = vcmask 1040384   ;;  %vm857_vm12 = vcmask 7168   ;;  %vm1173_vm15 = vcmask 588800  }
  0x17   : > { %1679 = vmatprep.subr.mxu1 %v2021_v11 }
  0x18   : > { %1680 = vmatpush3.msra.mxu1 %v2027_v12 }
  0x19   : > { %1681 = vmatprep.subr.mxu1 %v2033_v13 }
  0x1a   : > { %542 = vrot.lane.b32.xlu1 %v1939_v1, %s1854_s22  ;;  %564 = vrot.lane.b32.xlu0 %v1939_v1, %s1853_s21 }
  0x1b   : > { %1682 = vmatpush3.msra.mxu1 %v2039_v14 }
  0x1c   : > { %1683 = vmatprep.subr.mxu1 %v2045_v15 }
  0x1d   : > { %1684 = vmatpush3.msra.mxu1 %v2051_v16 }
  0x1e   : > { %520 = vrot.lane.b32.xlu1 %v1939_v1, %s1855_s23  ;;  %518 = vrot.lane.b32.xlu0 %v1931_v0, %s1855_s23 }
  0x1f   : > { %1685 = vmatprep.subr.mxu1 %v2057_v17 }
  0x20   : > { %1686 = vmatpush3.msra.mxu1 %v2063_v18 }
  0x22   : > { %432 = vrot.lane.b32.xlu1 %v1939_v1, %s1856_s24  ;;  %430 = vrot.lane.b32.xlu0 %v1931_v0, %s1856_s24 }
  0x26   : > { %476 = vrot.lane.b32.xlu1 %v1939_v1, %s1857_s25  ;;  %474 = vrot.lane.b32.xlu0 %v1931_v0, %s1857_s25 }
  0x2a   : > { %409 = vrot.lane.b32.xlu1 %v1939_v1, %s1859_s26  ;;  %407 = vrot.lane.b32.xlu0 %v1931_v0, %s1859_s26 }
  0x2e   : > { %454 = vrot.lane.b32.xlu1 %v1939_v1, %s1860_s17  ;;  %452 = vrot.lane.b32.xlu0 %v1931_v0, %s1860_s17 }
  0x84   : > { %v497_v22 = vpop.permute.xlu1 %496  ;;  %v563_v23 = vpop.permute.xlu0 %562 }
  0x88   : > { %v541_v29 = vpop.permute.xlu0 %540  ;;  %v499_v32 = vpop.permute.xlu1 %498 }
  0x89   : > { %v501_v33 = vsel %vm500_vm0, %v497_v22, %v499_v32  ;;  %v502_v34 = vsel %vm500_vm0, %v499_v32, %v497_v22 }
  0x8a   : > { %v516_v40 = vmul.f32 %v2085_v30, %v501_v33  ;;  %v517_v41 = vmul.f32 %v2088_v31, %v502_v34 }
  0x8c   : > { %v543_v42 = vpop.permute.xlu1 %542  ;;  %v565_v43 = vpop.permute.xlu0 %564  ;;  %v598_v54 = vrot.slane %v516_v40, 4  ;;  %v599_v55 = vrot.slane %v517_v41, 4  ;;  %v1648_v40 = vld [vmem:[%s2562_s0 + $0x6] sm:$0x3]  ;;  %v2153_v41 = vrot.slane %v1646_v35, %v2070_v24 }
  0x8d   : > { %v545_v46 = vsel %vm544_vm1, %v541_v29, %v543_v42  ;;  %v546_v47 = vsel %vm544_vm1, %v543_v42, %v541_v29  ;;  %v567_v48 = vsel %vm566_vm2, %v563_v23, %v565_v43  ;;  %v568_v49 = vsel %vm566_vm2, %v565_v43, %v563_v23 }
  0x8e   : > { %v560_v50 = vmul.f32 %v2100_v36, %v545_v46  ;;  %v561_v51 = vmul.f32 %v2103_v37, %v546_v47  ;;  %v582_v52 = vmul.f32 %v2106_v38, %v567_v48  ;;  %v583_v53 = vmul.f32 %v2109_v39, %v568_v49  ;;  %2600 = vst [vmem:[#allocation8_spill] sm:$0xff] %v2153_v41  ;;  %v416_v46 = vld [vmem:[%s2562_s0] sm:$0x3] }
  0x8f   : > { %v614_v27 = vsel %vm608_vm5, %v1939_v1, %v599_v55  ;;  %v613_v29 = vsel %vm608_vm5, %v1931_v0, %v598_v54  ;;  %v2156_v42 = vrot.slane %v1646_v35, %v2072_v25  ;;  %v2159_v43 = vrot.slane %v1648_v40, %v2070_v24 }
  0x90   : > { %v521_v56 = vpop.permute.xlu1 %520  ;;  %v519_v57 = vpop.permute.xlu0 %518  ;;  %v622_v58 = vpack.c.bf16 %v583_v53, %v583_v53  ;;  %v621_v59 = vpack.c.bf16 %v582_v52, %v582_v52  ;;  %v604_v60 = vrot.slane %v560_v50, 4  ;;  %v605_v63 = vrot.slane %v561_v51, 4  ;;  %v1647_v52 = vld [vmem:[%s2562_s0 + $0x4] sm:$0x3] }
  0x91   : > { %v523_v61 = vsel %vm522_vm3, %v519_v57, %v521_v56  ;;  %v524_v62 = vsel %vm522_vm3, %v521_v56, %v519_v57  ;;  %2601 = vst [vmem:[#allocation9_spill] sm:$0xff] %v2156_v42  ;;  %2602 = vst [vmem:[#allocation10_spill] sm:$0xff] %v2159_v43  ;;  %v2169_v49 = vrot.slane %v1648_v40, %v2072_v25 }
  0x92   : > { %v538_v19 = vmul.f32 %v2115_v44, %v523_v61  ;;  %v539_v20 = vmul.f32 %v2118_v45, %v524_v62  ;;  %1653 = vmatprep.subr.msk.bf16.mxu0 %vm627_vm4, %v622_v58  ;;  %v629_v22 = vsel %vm627_vm4, %v621_v59, 0  ;;  %v2180_v54 = vrot.slane %v416_v46, %v2070_v24 }
  0x93   : > { %645 = vmatpush1.bf16.msra.mxu0 %v629_v22  ;;  %2603 = vst [vmem:[#allocation11_spill] sm:$0xff] %v2169_v49  ;;  %v2183_v55 = vrot.slane %v416_v46, %v2072_v25 }
  0x94   : > { %v433_v23 = vpop.permute.xlu1 %432  ;;  %v431_v26 = vpop.permute.xlu0 %430  ;;  %v616_v28 = vsel %vm608_vm5, %v539_v20, %v605_v63  ;;  %v615_v32 = vsel %vm608_vm5, %v538_v19, %v604_v60  ;;  %2604 = vst [vmem:[#allocation12_spill] sm:$0xff] %v2180_v54  ;;  %v2195_v63 = vrot.slane %v1647_v52, %v2070_v24  ;;  %v2198_v19 = vrot.slane %v1647_v52, %v2072_v25  ;;  %v2234_v52 = vld [vmem:[%s2563_s1 + $0xb8] sm:$0xff] }
  0x95   : > { %v620_v33 = vpack.c.bf16 %v616_v28, %v614_v27  ;;  %v619_v34 = vpack.c.bf16 %v615_v32, %v613_v29  ;;  %v435_v47 = vsel %vm434_vm6, %v431_v26, %v433_v23  ;;  %v436_v48 = vsel %vm434_vm6, %v433_v23, %v431_v26  ;;  %2605 = vst [vmem:[#allocation13_spill] sm:$0xff] %v2183_v55 }
  0x96   : > { %v450_v57 = vmul.f32 %v2153_v41, %v436_v48  ;;  %v451_v58 = vmul.f32 %v2156_v42, %v435_v47  ;;  %2606 = vst [vmem:[#allocation14_spill] sm:$0xff] %v2195_v63  ;;  %2607 = vst [vmem:[#allocation15_spill] sm:$0xff] %v2198_v19  ;;  %1687 = vmatprep.subr.mxu1 %v2234_v52 }
  0x97   : > { %646 = vmatprep.subr.bf16.mxu0 %v620_v33 }
  0x98   : > { %v477_v1 = vpop.permute.xlu1 %476  ;;  %647 = vmatpush1.bf16.msra.mxu0 %v619_v34  ;;  %v475_v0 = vpop.permute.xlu0 %474  ;;  %v586_v27 = vrot.slane %v450_v57, 4  ;;  %v587_v28 = vrot.slane %v451_v58, 4  ;;  %v2254_v57 = vld [vmem:[%s2563_s1 + $0x30] sm:$0xff]  ;;  %v2261_v58 = vld [vmem:[%s2563_s1 + $0xa8] sm:$0xff] }
  0x99   : > { %v479_v50 = vsel %vm478_vm7, %v475_v0, %v477_v1  ;;  %v480_v51 = vsel %vm478_vm7, %v477_v1, %v475_v0 }
  0x9a   : > { %v494_v61 = vmul.f32 %v2159_v43, %v480_v51  ;;  %v495_v62 = vmul.f32 %v2169_v49, %v479_v50  ;;  %v397_v51 = vld [vmem:[%s2566_s4] sm:$0xf] }
  0x9c   : > { %v410_v53 = vpop.permute.xlu1 %409  ;;  %v408_v56 = vpop.permute.xlu0 %407  ;;  %v592_v33 = vrot.slane %v494_v61, 4  ;;  %v593_v34 = vrot.slane %v495_v62, 4  ;;  %v2282_v61 = vld [vmem:[%s2563_s1 + $0x20] sm:$0xff]  ;;  %v2287_v62 = vld [vmem:[%s2563_s1 + $0x98] sm:$0xff] }
  0x9d   : > { %v414_v59 = vsel %vm413_vm8, %v408_v56, %v410_v53  ;;  %v415_v60 = vsel %vm413_vm8, %v410_v53, %v408_v56  ;;  %v2240_v53 = vld [vmem:[%s2563_s1 + $0x38] sm:$0xff]  ;;  %v2247_v56 = vld [vmem:[%s2563_s1 + $0xb0] sm:$0xff] }
  0x9e   : > { %v428_v20 = vmul.f32 %v2180_v54, %v415_v60  ;;  %v429_v22 = vmul.f32 %v2183_v55, %v414_v59  ;;  %1688 = vmatpush3.msra.mxu1 %v2240_v53  ;;  %v2268_v59 = vld [vmem:[%s2563_s1 + $0x28] sm:$0xff]  ;;  %v2275_v60 = vld [vmem:[%s2563_s1 + $0xa0] sm:$0xff] }
  0x9f   : > { %1689 = vmatprep.subr.mxu1 %v2247_v56 }
  0xa0   : > { %v455_v23 = vpop.permute.xlu1 %454  ;;  %v453_v26 = vpop.permute.xlu0 %452  ;;  %v610_v1 = vsel %vm608_vm5, %v429_v22, %v587_v28  ;;  %v609_v46 = vsel %vm608_vm5, %v428_v20, %v586_v27  ;;  %1690 = vmatpush3.msra.mxu1 %v2254_v57  ;;  %v2293_v20 = vld [vmem:[%s2563_s1 + $0x18] sm:$0xff]  ;;  %v2300_v22 = vld [vmem:[%s2563_s1 + $0x90] sm:$0xff]  ;;  %v2321_v27 = vld [vmem:[%s2563_s1 + $0x8] sm:$0xff] }
  0xa1   : > { %v457_v29 = vsel %vm456_vm9, %v453_v26, %v455_v23  ;;  %v458_v32 = vsel %vm456_vm9, %v455_v23, %v453_v26  ;;  %1691 = vmatprep.subr.mxu1 %v2261_v58  ;;  %v2307_v23 = vld [vmem:[%s2563_s1 + $0x10] sm:$0xff]  ;;  %v2314_v26 = vld [vmem:[%s2563_s1 + $0x88] sm:$0xff]  ;;  %v2328_v28 = vld [vmem:[%s2563_s1 + $0x80] sm:$0xff] }
  0xa2   : > { %v472_v35 = vmul.f32 %v2195_v63, %v458_v32  ;;  %v473_v40 = vmul.f32 %v2198_v19, %v457_v29  ;;  %1692 = vmatpush3.msra.mxu1 %v2268_v59  ;;  %v2335_v29 = vld [vmem:[%s2563_s1] sm:$0xff] }
  0xa3   : > { %1693 = vmatprep.subr.mxu1 %v2275_v60 }
  0xa4   : > { %v612_v0 = vsel %vm608_vm5, %v473_v40, %v593_v34  ;;  %v611_v47 = vsel %vm608_vm5, %v472_v35, %v592_v33  ;;  %1694 = vmatpush3.msra.mxu1 %v2282_v61 }
  0xa5   : > { %v618_v48 = vpack.c.bf16 %v612_v0, %v610_v1  ;;  %v617_v50 = vpack.c.bf16 %v611_v47, %v609_v46  ;;  %1695 = vmatprep.subr.mxu1 %v2287_v62 }
  0xa6   : > { %1696 = vmatpush3.msra.mxu1 %v2293_v20 }
  0xa7   : > { %648 = vmatprep.subr.bf16.mxu0 %v618_v48  ;;  %1697 = vmatprep.subr.mxu1 %v2300_v22 }
  0xa8   : > { %649 = vmatpush1.bf16.msra.mxu0 %v617_v50  ;;  %1698 = vmatpush3.msra.mxu1 %v2307_v23 }
  0xa9   : > { %1706 = vmatprep.subr.mxu0 %v1970_v3  ;;  %1699 = vmatprep.subr.mxu1 %v2314_v26 }
  0xaa   : > { %1700 = vmatpush3.msra.mxu1 %v2321_v27 }
  0xab   : > { %1654 = vmatmul.mubr.msk.bf16.vlgmr.msra.gmra.mxu0 %vm623_vm10, %v397_v51  ;;  %1701 = vmatprep.subr.mxu1 %v2328_v28 }
  0xac   : > { %1707 = vmatpush3.msra.mxu0 %v1975_v4  ;;  %1702 = vmatpush3.msra.mxu1 %v2335_v29 }
  0xad   : > { %1708 = vmatprep.subr.mxu0 %v1982_v5 }
  0xae   : > { %1709 = vmatpush3.msra.mxu0 %v1988_v6 }
  0xaf   : > { %1710 = vmatprep.subr.mxu0 %v1997_v7 }
  0xb0   : > { %1711 = vmatpush3.msra.mxu0 %v2003_v8 }
  0xb1   : > { %1712 = vmatprep.subr.mxu0 %v2009_v9 }
  0xb2   : > { %1713 = vmatpush3.msra.mxu0 %v2015_v10 }
  0xb3   : > { %1714 = vmatprep.subr.mxu0 %v2021_v11 }
  0xb4   : > { %1715 = vmatpush3.msra.mxu0 %v2027_v12 }
  0xb5   : > { %1716 = vmatprep.subr.mxu0 %v2033_v13 }
  0xb6   : > { %1717 = vmatpush3.msra.mxu0 %v2039_v14 }
  0xb7   : > { %1718 = vmatprep.subr.mxu0 %v2045_v15 }
  0xb8   : > { %1719 = vmatpush3.msra.mxu0 %v2051_v16 }
  0xb9   : > { %1720 = vmatprep.subr.mxu0 %v2057_v17 }
  0xba   : > { %1721 = vmatpush3.msra.mxu0 %v2063_v18 }
  0xbb   : > { %1722 = vmatprep.subr.mxu0 %v2234_v52 }
  0xbc   : > { %1723 = vmatpush3.msra.mxu0 %v2240_v53 }
  0xbd   : > { %1724 = vmatprep.subr.mxu0 %v2247_v56 }
  0xbe   : > { %1725 = vmatpush3.msra.mxu0 %v2254_v57 }
  0xbf   : > { %1726 = vmatprep.subr.mxu0 %v2261_v58 }
  0xc0   : > { %1727 = vmatpush3.msra.mxu0 %v2268_v59 }
  0xc1   : > { %1728 = vmatprep.subr.mxu0 %v2275_v60 }
  0xc2   : > { %1729 = vmatpush3.msra.mxu0 %v2282_v61 }
  0xc3   : > { %1730 = vmatprep.subr.mxu0 %v2287_v62 }
  0xc4   : > { %1731 = vmatpush3.msra.mxu0 %v2293_v20 }
  0xc5   : > { %1732 = vmatprep.subr.mxu0 %v2300_v22 }
  0xc6   : > { %1733 = vmatpush3.msra.mxu0 %v2307_v23 }
  0xc7   : > { %1734 = vmatprep.subr.mxu0 %v2314_v26 }
  0xc8   : > { %1735 = vmatpush3.msra.mxu0 %v2321_v27 }
  0xc9   : > { %1736 = vmatprep.subr.mxu0 %v2328_v28 }
  0xca   : > { %1737 = vmatpush3.msra.mxu0 %v2335_v29 }
 0x16b   : > { %v2343_v32 = vpop.f32.mrf.mxu0 }
 0x16c   : > { %v675_v33 = vrot.slane %v2343_v32, 4  ;;  %v687_v34 = vmul.f32 %v2343_v32, %v2343_v32 }
 0x16d   : > { %v2348_v35 = vpop.f32.mrf.mxu0 }
 0x16e   : > { %v676_v40 = vadd.f32 %v675_v33, %v2343_v32  ;;  %v689_v1 = vrot.slane %v687_v34, 4  ;;  %v681_v0 = vrot.slane %v2348_v35, 4  ;;  %v688_v46 = vmul.f32 %v2348_v35, %v2348_v35 }
 0x16f   : > { %v672_v47 = vpop.f32.mrf.mxu0 }
 0x170   : > { %v677_v48 = vrot.slane %v676_v40, 2  ;;  %v690_v50 = vadd.f32 %v689_v1, %v687_v34  ;;  %v695_v51 = vrot.slane %v688_v46, 4  ;;  %v682_v2 = vadd.f32 %v681_v0, %v2348_v35 }
 0x171   : > { %v673_v42 = vpop.f32.mrf.mxu0 }
 0x172   : > { %v691_v41 = vrot.slane %v690_v50, 2  ;;  %v696_v55 = vadd.f32 %v695_v51, %v688_v46  ;;  %v683_v54 = vrot.slane %v682_v2, 2  ;;  %v678_v49 = vadd.f32 %v677_v48, %v676_v40  ;;  %v396_v42 = vld [vmem:[%s2564_s2] sm:$0x3] }
 0x174   : > { %v684_v43 = vadd.f32 %v683_v54, %v682_v2  ;;  %v697_v19 = vrot.slane %v696_v55, 2  ;;  %v692_v33 = vadd.f32 %v691_v41, %v690_v50  ;;  %v679_v63 = vrot.slane %v678_v49, 1 }
 0x175   : > { %v2359_v2 = vrot.slane %v396_v42, %v2072_v25  ;;  %v2362_v41 = vrot.slane %v396_v42, %v2070_v24  ;;  %v399_v25 = vld [vmem:[%s2567_s5] sm:$0xff]  ;;  %v2610_v50 = vmov 0  }
 0x176   : > { %v685_v31 = vrot.slane %v684_v43, 1  ;;  %v698_v30 = vadd.f32 %v697_v19, %v696_v55  ;;  %v693_v37 = vrot.slane %v692_v33, 1  ;;  %v680_v47 = vadd.f32 %v679_v63, %v678_v49  ;;  %1033 = vperm.xlu0 %1829, %v399_v25  }
 0x177   : > { %2608 = vst [vmem:[#allocation16_spill] sm:$0xff] %v2359_v2  ;;  %2609 = vst [vmem:[#allocation17_spill] sm:$0xff] %v2362_v41  ;;  %1655 = vmatprep.subr.msk.mxu0 %vm861_vm11, %v2359_v2  ;;  %1658 = vmatprep.subr.msk.mxu1 %vm861_vm11, %v2359_v2 }
 0x178   : > { %v686_v36 = vadd.f32 %v685_v31, %v684_v43  ;;  %v699_v45 = vrot.slane %v698_v30, 1  ;;  %v694_v1 = vadd.f32 %v693_v37, %v692_v33  ;;  %v400_v31 = vld [vmem:[%s2568_s6] sm:$0xff] }
 0x179   : > { %1040 = vperm.xlu1 %1830, %v400_v31  }
 0x17a   : > { %765 = vmatprep.mubr.f32.mxu1 %v686_v36  ;;  %v700_v34 = vadd.f32 %v699_v45, %v698_v30  ;;  %v2587_v30 = vmov 0.0  }
 0x17b   : > { %766 = vmatmul.mubr.f32.vlgmr.msra.gmra.mxu1 %v680_v47 }
 0x17c   : > { %835 = vmatprep.mubr.f32.mxu0 %v700_v34  ;;  %1659 = vmatpush1.msk.msra.mxu1 %vm861_vm11, %v2362_v41 }
 0x17d   : > { %836 = vmatmul.mubr.f32.vlgmr.msra.gmra.mxu0 %v694_v1  ;;  %1004 = vmatprep.mubr.f32.mxu1 %v2587_v30 }
 0x17e   : > { %1656 = vmatpush1.msk.msra.mxu0 %vm861_vm11, %v2362_v41  ;;  %930 = vmatprep.mubr.f32.mxu0 %v2587_v30 }
 0x17f   : > { %1741 = vmatprep.subr.mxu0 %v1970_v3 }
 0x23b   : > { %v1703_v36 = vpop.f32.mrf.mxu1 }
 0x23d   : > { %v1704_v37 = vpop.f32.mrf.mxu1  ;;  %v1738_v45 = vpop.f32.mrf.mxu0 }
 0x23e   : > { %v1705_v43 = vadd.f32 %v1704_v37, %v1703_v36  ;;  %v1034_v36 = vpop.permute.xlu0 %1033 }
 0x23f   : > { %v1739_v49 = vpop.f32.mrf.mxu0 }
 0x240   : > { %v841_v54 = vmul.f32 0.00048828125, %v1705_v43  ;;  %v1740_v55 = vadd.f32 %v1739_v49, %v1738_v45  ;;  %v1041_v49 = vpop.permute.xlu1 %1040 }
 0x242   : > { %v843_v63 = vmul.f32 %v841_v54, %v841_v54  ;;  %v842_v19 = vmul.f32 0.00048828125, %v1740_v55  ;;  %1657 = vmatmul.mubr.msk.f32.vlgmr.msra.gmra.mxu0 %vm857_vm12, %v841_v54 }
 0x243   : > { %1742 = vmatpush3.msra.mxu0 %v1975_v4 }
 0x244   : > { %v844_v40 = vsub.f32 %v842_v19, %v843_v63  ;;  %1743 = vmatprep.subr.mxu0 %v1982_v5 }
 0x245   : > { %1744 = vmatpush3.msra.mxu0 %v1988_v6 }
 0x246   : > { %v845_v0 = vmax.f32 %v844_v40, 0.0  ;;  %1745 = vmatprep.subr.mxu0 %v1997_v7 }
 0x247   : > { %1746 = vmatpush3.msra.mxu0 %v2003_v8 }
 0x248   : > { %v846_v46 = vadd.f32 1e-05, %v845_v0  ;;  %1747 = vmatprep.subr.mxu0 %v2009_v9 }
 0x249   : > { %1748 = vmatpush3.msra.mxu0 %v2015_v10 }
 0x24a   : > { %1832 = vrsqrt.f32 %v846_v46  ;;  %1749 = vmatprep.subr.mxu0 %v2021_v11 }
 0x24b   : > { %1750 = vmatpush3.msra.mxu0 %v2027_v12 }
 0x24c   : > { %1751 = vmatprep.subr.mxu0 %v2033_v13 }
 0x24d   : > { %1752 = vmatpush3.msra.mxu0 %v2039_v14 }
 0x24e   : > { %1753 = vmatprep.subr.mxu0 %v2045_v15 }
 0x24f   : > { %1754 = vmatpush3.msra.mxu0 %v2051_v16 }
 0x250   : > { %1755 = vmatprep.subr.mxu0 %v2057_v17 }
 0x251   : > { %1756 = vmatpush3.msra.mxu0 %v2063_v18 }
 0x252   : > { %1757 = vmatprep.subr.mxu0 %v2234_v52 }
 0x253   : > { %1758 = vmatpush3.msra.mxu0 %v2240_v53 }
 0x254   : > { %1759 = vmatprep.subr.mxu0 %v2247_v56 }
 0x255   : > { %1760 = vmatpush3.msra.mxu0 %v2254_v57 }
 0x256   : > { %1761 = vmatprep.subr.mxu0 %v2261_v58 }
 0x257   : > { %v1833_v48 = vpop.eup %1832  ;;  %1762 = vmatpush3.msra.mxu0 %v2268_v59 }
 0x258   : > { %1660 = vmatmul.mubr.msk.f32.vlgmr.msra.gmra.mxu1 %vm857_vm12, %v1833_v48  ;;  %1763 = vmatprep.subr.mxu0 %v2275_v60 }
 0x259   : > { %1215 = vmatprep.mubr.bf16.mxu1 %v2610_v50  ;;  %1764 = vmatpush3.msra.mxu0 %v2282_v61 }
 0x25a   : > { %1765 = vmatprep.subr.mxu0 %v2287_v62 }
 0x25b   : > { %1766 = vmatpush3.msra.mxu0 %v2293_v20 }
 0x25c   : > { %1767 = vmatprep.subr.mxu0 %v2300_v22 }
 0x25d   : > { %1768 = vmatpush3.msra.mxu0 %v2307_v23 }
 0x25e   : > { %1769 = vmatprep.subr.mxu0 %v2314_v26 }
 0x25f   : > { %1770 = vmatpush3.msra.mxu0 %v2321_v27 }
 0x260   : > { %1771 = vmatprep.subr.mxu0 %v2328_v28 }
 0x261   : > { %1772 = vmatpush3.msra.mxu0 %v2335_v29 }
 0x262   : > { %1663 = vmatprep.subr.msk.mxu0 %vm861_vm11, %v2359_v2 }
 0x302   : > { %v932_v51 = vpop.f32.mrf.mxu0 }
 0x303   : > { %v1014_v47 = vrot.slane %v932_v51, %v2070_v24 }
 0x304   : > { %v934_v33 = vpop.f32.mrf.mxu0 }
 0x305   : > { %v1018_v34 = vrot.slane %v934_v33, %v2070_v24  ;;  %v1019_v42 = vsub.f32 %v2343_v32, %v1014_v47 }
 0x307   : > { %v1020_v37 = vsub.f32 %v2348_v35, %v1018_v34 }
 0x318   : > { %v1006_v1 = vpop.f32.mrf.mxu1 }
 0x319   : > { %v1024_v25 = vrot.slane %v1006_v1, %v2070_v24 }
 0x31a   : > { %v1008_v31 = vpop.f32.mrf.mxu1 }
 0x31b   : > { %v1029_v45 = vmul.f32 %v1024_v25, %v1019_v42  ;;  %v1028_v43 = vrot.slane %v1008_v31, %v2070_v24 }
 0x31d   : > { %v1030_v54 = vmul.f32 %v1028_v43, %v1020_v37  ;;  %v1036_v55 = vmul.f32 %v1034_v36, %v1029_v45 }
 0x31f   : > { %v1037_v63 = vmul.f32 %v1034_v36, %v1030_v54  ;;  %v1043_v19 = vadd.f32 %v1041_v49, %v1036_v55 }
 0x321   : > { %v1044_v40 = vadd.f32 %v1041_v49, %v1037_v63  ;;  %v1047_v0 = vmul.f32 0.70710677, %v1043_v19 }
 0x323   : > { %v1048_v46 = vmul.f32 0.70710677, %v1044_v40  ;;  %v1049_v48 = vand.u32 2147483647, %v1047_v0  ;;  %vm1089_vm13 = vcmp.ge.f32.partialorder %v1047_v0, 0.0 }
 0x325   : > { %v1050_v50 = vand.u32 2147483647, %v1048_v46  ;;  %v1051_v32 = vmul.f32 0.3275911, %v1049_v48  ;;  %v1077_v35 = vsub.f32 0.0, %v1049_v48  ;;  %vm1090_vm14 = vcmp.ge.f32.partialorder %v1048_v46, 0.0 }
 0x327   : > { %v1052_v51 = vmul.f32 0.3275911, %v1050_v50  ;;  %v1053_v33 = vadd.f32 1.0, %v1051_v32  ;;  %v1078_v34 = vsub.f32 0.0, %v1050_v50  ;;  %v1079_v1 = vmul.f32 %v1077_v35, %v1049_v48 }
 0x329   : > { %v1054_v47 = vadd.f32 1.0, %v1052_v51  ;;  %1834 = vrcp.f32 %v1053_v33  ;;  %v1080_v42 = vmul.f32 %v1078_v34, %v1050_v50  ;;  %v1081_v37 = vmul.f32 1.442695, %v1079_v1 }
 0x32b   : > { %1836 = vrcp.f32 %v1054_v47  ;;  %v1083_v49 = vmul.f32 1.442695, %v1080_v42 }
 0x32c   : > { %1838 = vpow2.f32 %v1081_v37 }
 0x32d   : > { %1840 = vpow2.f32 %v1083_v49 }
 0x336   : > { %v1835_v25 = vpop.eup %1834 }
 0x337   : > { %v1059_v31 = vmul.f32 1.0614054, %v1835_v25 }
 0x338   : > { %v1837_v36 = vpop.eup %1836 }
 0x339   : > { %v1060_v45 = vmul.f32 1.0614054, %v1837_v36  ;;  %v1061_v43 = vadd.f32 -1.4531521, %v1059_v31  ;;  %v1839_v2 = vpop.eup %1838 }
 0x33a   : > { %v1841_v42 = vpop.eup %1840 }
 0x33b   : > { %v1062_v54 = vadd.f32 -1.4531521, %v1060_v45  ;;  %v1063_v55 = vmul.f32 %v1835_v25, %v1061_v43 }
 0x33d   : > { %v1064_v63 = vmul.f32 %v1837_v36, %v1062_v54  ;;  %v1065_v30 = vadd.f32 1.4214138, %v1063_v55 }
 0x33f   : > { %v1066_v32 = vadd.f32 1.4214138, %v1064_v63  ;;  %v1067_v51 = vmul.f32 %v1835_v25, %v1065_v30  ;;  %v1045_v30 = vmul.f32 0.5, %v1043_v19 }
 0x341   : > { %v1068_v33 = vmul.f32 %v1837_v36, %v1066_v32  ;;  %v1069_v47 = vadd.f32 -0.28449672, %v1067_v51  ;;  %v1046_v51 = vmul.f32 0.5, %v1044_v40 }
 0x343   : > { %v1070_v24 = vadd.f32 -0.28449672, %v1068_v33  ;;  %v1071_v48 = vmul.f32 %v1835_v25, %v1069_v47 }
 0x345   : > { %v1072_v50 = vmul.f32 %v1837_v36, %v1070_v24  ;;  %v1073_v35 = vadd.f32 0.2548296, %v1071_v48 }
 0x347   : > { %v1074_v34 = vadd.f32 0.2548296, %v1072_v50  ;;  %v1075_v1 = vmul.f32 %v1835_v25, %v1073_v35 }
 0x349   : > { %v1076_v41 = vmul.f32 %v1837_v36, %v1074_v34  ;;  %v1085_v31 = vmul.f32 %v1839_v2, %v1075_v1  ;;  %v401_v2 = vld [vmem:[%s2570_s8] sm:$0xff] }
 0x34b   : > { %v1086_v45 = vmul.f32 %v1841_v42, %v1076_v41  ;;  %v1087_v43 = vsub.f32 1.0, %v1085_v31  ;;  %v402_v41 = vld [vmem:[%s2571_s9] sm:$0xff] }
 0x34d   : > { %v1088_v37 = vsub.f32 1.0, %v1086_v45  ;;  %v1091_v54 = vsub.f32 0.0, %v1087_v43 }
 0x34f   : > { %v1092_v49 = vsub.f32 0.0, %v1088_v37  ;;  %v1093_v55 = vsel %vm1089_vm13, %v1087_v43, %v1091_v54  ;;  %v2611_v54 = vld [vmem:[#allocation7_spill] sm:$0xff] }
 0x350   : > { %v1095_v63 = vadd.f32 1.0, %v1093_v55  ;;  %v2612_v55 = vld [vmem:[#allocation5_spill] sm:$0xff] }
 0x351   : > { %v1094_v32 = vsel %vm1090_vm14, %v1088_v37, %v1092_v49 }
 0x352   : > { %v1096_v24 = vadd.f32 1.0, %v1094_v32  ;;  %v2423_v33 = vmul.f32 %v1095_v63, %v1045_v30  ;;  %v2613_v63 = vld [vmem:[#allocation6_spill] sm:$0xff] }
 0x354   : > { %v1098_v25 = vmul.f32 %v1096_v24, %v1046_v51  ;;  %1155 = vrot.lane.b32.xlu1 %v2423_v33, %s1853_s21 }
 0x356   : > { %1157 = vrot.lane.b32.xlu0 %v1098_v25, %s1853_s21 }
 0x358   : > { %1139 = vrot.lane.b32.xlu1 %v2423_v33, %s1855_s23 }
 0x35a   : > { %1141 = vrot.lane.b32.xlu0 %v1098_v25, %s1855_s23 }
 0x35c   : > { %1147 = vrot.lane.b32.xlu1 %v2423_v33, %s1854_s22 }
 0x35e   : > { %1149 = vrot.lane.b32.xlu0 %v1098_v25, %s1854_s22 }
 0x360   : > { %1131 = vrot.lane.b32.xlu1 %v2423_v33, %s1852_s20 }
 0x362   : > { %1133 = vrot.lane.b32.xlu0 %v1098_v25, %s1852_s20 }
 0x364   : > { %1115 = vrot.lane.b32.xlu1 %v2423_v33, %s1860_s17 }
 0x366   : > { %1117 = vrot.lane.b32.xlu0 %v1098_v25, %s1860_s17 }
 0x368   : > { %1123 = vrot.lane.b32.xlu1 %v2423_v33, %s1857_s25 }
 0x36a   : > { %1125 = vrot.lane.b32.xlu0 %v1098_v25, %s1857_s25 }
 0x36c   : > { %1099 = vrot.lane.b32.xlu1 %v2423_v33, %s1859_s26 }
 0x36e   : > { %1101 = vrot.lane.b32.xlu0 %v1098_v25, %s1859_s26  ;;  %s1645_s26 = sshll.u32 %s2629_s15, 3 }
 0x36f   : > { %s361_s19 = scalar_lea.vmem %s2572_s10, %s1645_s26 }
 0x370   : > { %1107 = vrot.lane.b32.xlu1 %v2423_v33, %s1856_s24 }
 0x372   : > { %1109 = vrot.lane.b32.xlu0 %v1098_v25, %s1856_s24 }
 0x374   : > { %1567 = vperm.xlu1 %1830, %v401_v2  }
 0x376   : > { %1574 = vperm.xlu0 %1829, %v402_v41  }
 0x3c6   : > { %v1156_v19 = vpop.permute.xlu1 %1155 }
 0x3c8   : > { %v1158_v40 = vpop.permute.xlu0 %1157 }
 0x3c9   : > { %v1159_v0 = vsel %vm566_vm2, %v1156_v19, %v1158_v40  ;;  %v1160_v46 = vsel %vm566_vm2, %v1158_v40, %v1156_v19 }
 0x3ca   : > { %v1161_v36 = vmul.f32 %v1159_v0, %v2106_v38  ;;  %v1162_v47 = vmul.f32 %v1160_v46, %v2109_v39  ;;  %v1140_v48 = vpop.permute.xlu1 %1139  ;;  %v2614_v0 = vld [vmem:[#allocation3_spill] sm:$0xff] }
 0x3cc   : > { %v1171_v50 = vpack.c.bf16 %v1161_v36, %v1161_v36  ;;  %v1172_v35 = vpack.c.bf16 %v1162_v47, %v1162_v47  ;;  %v1142_v34 = vpop.permute.xlu0 %1141  ;;  %v2615_v36 = vld [vmem:[#allocation4_spill] sm:$0xff] }
 0x3cd   : > { %v1143_v42 = vsel %vm522_vm3, %v1140_v48, %v1142_v34  ;;  %v1144_v45 = vsel %vm522_vm3, %v1142_v34, %v1140_v48 }
 0x3ce   : > { %1661 = vmatprep.subr.msk.bf16.mxu1 %vm608_vm5, %v1172_v35  ;;  %v1148_v1 = vpop.permute.xlu1 %1147  ;;  %v1178_v31 = vsel %vm608_vm5, %v1171_v50, 0  ;;  %v1145_v37 = vmul.f32 %v1143_v42, %v2115_v44  ;;  %v1146_v49 = vmul.f32 %v1144_v45, %v2611_v54 }
 0x3cf   : > { %1190 = vmatpush1.bf16.msra.mxu1 %v1178_v31 }
 0x3d0   : > { %v1150_v43 = vpop.permute.xlu0 %1149 }
 0x3d1   : > { %v1151_v38 = vsel %vm544_vm1, %v1148_v1, %v1150_v43  ;;  %v1152_v39 = vsel %vm544_vm1, %v1150_v43, %v1148_v1 }
 0x3d2   : > { %v1153_v30 = vmul.f32 %v1151_v38, %v2612_v55  ;;  %v1154_v32 = vmul.f32 %v1152_v39, %v2613_v63  ;;  %v1132_v51 = vpop.permute.xlu1 %1131  ;;  %v2616_v38 = vld [vmem:[#allocation14_spill] sm:$0xff]  ;;  %v2617_v39 = vld [vmem:[#allocation15_spill] sm:$0xff] }
 0x3d4   : > { %v1169_v24 = vpack.c.bf16 %v1153_v30, %v1145_v37  ;;  %v1134_v2 = vpop.permute.xlu0 %1133  ;;  %v1170_v41 = vpack.c.bf16 %v1154_v32, %v1146_v49  ;;  %v2618_v37 = vld [vmem:[#allocation10_spill] sm:$0xff]  ;;  %v2619_v49 = vld [vmem:[#allocation11_spill] sm:$0xff] }
 0x3d5   : > { %v1135_v19 = vsel %vm500_vm0, %v1132_v51, %v1134_v2  ;;  %v1136_v40 = vsel %vm500_vm0, %v1134_v2, %v1132_v51 }
 0x3d6   : > { %v1137_v46 = vmul.f32 %v1135_v19, %v2614_v0  ;;  %v1138_v44 = vmul.f32 %v1136_v40, %v2615_v36  ;;  %1191 = vmatprep.subr.bf16.mxu1 %v1170_v41  ;;  %v1116_v47 = vpop.permute.xlu1 %1115 }
 0x3d7   : > { %1192 = vmatpush1.bf16.msra.mxu1 %v1169_v24 }
 0x3d8   : > { %v1167_v48 = vpack.c.bf16 %v1137_v46, %v2423_v33  ;;  %v1118_v50 = vpop.permute.xlu0 %1117  ;;  %v1168_v35 = vpack.c.bf16 %v1138_v44, %v1098_v25  ;;  %v2620_v46 = vld [vmem:[#allocation12_spill] sm:$0xff]  ;;  %v2621_v44 = vld [vmem:[#allocation13_spill] sm:$0xff] }
 0x3d9   : > { %v1119_v1 = vsel %vm456_vm9, %v1116_v47, %v1118_v50  ;;  %v1120_v31 = vsel %vm456_vm9, %v1118_v50, %v1116_v47 }
 0x3da   : > { %1193 = vmatprep.subr.bf16.mxu1 %v1168_v35  ;;  %v1124_v34 = vpop.permute.xlu1 %1123  ;;  %v1121_v33 = vmul.f32 %v1120_v31, %v2616_v38  ;;  %v1122_v25 = vmul.f32 %v1119_v1, %v2617_v39  ;;  %v2623_v35 = vld [vmem:[#allocation9_spill] sm:$0xff] }
 0x3db   : > { %1194 = vmatpush1.bf16.msra.mxu1 %v1167_v48  ;;  %v2622_v48 = vld [vmem:[#allocation8_spill] sm:$0xff] }
 0x3dc   : > { %v1126_v42 = vpop.permute.xlu0 %1125 }
 0x3dd   : > { %v1127_v45 = vsel %vm478_vm7, %v1124_v34, %v1126_v42  ;;  %v1128_v43 = vsel %vm478_vm7, %v1126_v42, %v1124_v34  ;;  %v398_v42 = vld [vmem:[%s2569_s7] sm:$0xf] }
 0x3de   : > { %v1129_v54 = vmul.f32 %v1128_v43, %v2618_v37  ;;  %v1130_v55 = vmul.f32 %v1127_v45, %v2619_v49  ;;  %v1100_v30 = vpop.permute.xlu1 %1099 }
 0x3e0   : > { %v1165_v63 = vpack.c.bf16 %v1129_v54, %v1121_v33  ;;  %v1102_v32 = vpop.permute.xlu0 %1101  ;;  %v1166_v51 = vpack.c.bf16 %v1130_v55, %v1122_v25 }
 0x3e1   : > { %v1103_v24 = vsel %vm413_vm8, %v1100_v30, %v1102_v32  ;;  %v1104_v2 = vsel %vm413_vm8, %v1102_v32, %v1100_v30 }
 0x3e2   : > { %1195 = vmatprep.subr.bf16.mxu1 %v1166_v51  ;;  %v1108_v41 = vpop.permute.xlu1 %1107  ;;  %v1105_v36 = vmul.f32 %v1104_v2, %v2620_v46  ;;  %v1106_v47 = vmul.f32 %v1103_v24, %v2621_v44  ;;  %v2627_v2 = vld [vmem:[#allocation2_spill] sm:$0xff] }
 0x3e3   : > { %1196 = vmatpush1.bf16.msra.mxu1 %v1165_v63 }
 0x3e4   : > { %v1110_v19 = vpop.permute.xlu0 %1109 }
 0x3e5   : > { %v1111_v40 = vsel %vm434_vm6, %v1108_v41, %v1110_v19  ;;  %v1112_v0 = vsel %vm434_vm6, %v1110_v19, %v1108_v41 }
 0x3e6   : > { %v1113_v50 = vmul.f32 %v1112_v0, %v2622_v48  ;;  %v1114_v34 = vmul.f32 %v1111_v40, %v2623_v35 }
 0x3e8   : > { %v1163_v1 = vpack.c.bf16 %v1113_v50, %v1105_v36  ;;  %v1164_v31 = vpack.c.bf16 %v1114_v34, %v1106_v47 }
 0x3ea   : > { %1197 = vmatprep.subr.bf16.mxu1 %v1164_v31 }
 0x3eb   : > { %1198 = vmatpush1.bf16.msra.mxu1 %v1163_v1 }
 0x3ec   : > { %1776 = vmatprep.subr.mxu1 %v1970_v3 }
 0x3ee   : > { %1662 = vmatmul.mubr.msk.bf16.vlgmr.msra.gmra.mxu1 %vm1173_vm15, %v398_v42 }
 0x3ef   : > { %1777 = vmatpush3.msra.mxu1 %v1975_v4  ;;  %v1568_v50 = vpop.permute.xlu1 %1567 }
 0x3f0   : > { %1778 = vmatprep.subr.mxu1 %v1982_v5 }
 0x3f1   : > { %1779 = vmatpush3.msra.mxu1 %v1988_v6  ;;  %v1575_v1 = vpop.permute.xlu0 %1574 }
 0x3f2   : > { %1780 = vmatprep.subr.mxu1 %v1997_v7 }
 0x3f3   : > { %1781 = vmatpush3.msra.mxu1 %v2003_v8 }
 0x3f4   : > { %1782 = vmatprep.subr.mxu1 %v2009_v9 }
 0x3f5   : > { %1783 = vmatpush3.msra.mxu1 %v2015_v10 }
 0x3f6   : > { %1784 = vmatprep.subr.mxu1 %v2021_v11 }
 0x3f7   : > { %1785 = vmatpush3.msra.mxu1 %v2027_v12 }
 0x3f8   : > { %1786 = vmatprep.subr.mxu1 %v2033_v13 }
 0x3f9   : > { %1787 = vmatpush3.msra.mxu1 %v2039_v14 }
 0x3fa   : > { %1788 = vmatprep.subr.mxu1 %v2045_v15 }
 0x3fb   : > { %1789 = vmatpush3.msra.mxu1 %v2051_v16 }
 0x3fc   : > { %1790 = vmatprep.subr.mxu1 %v2057_v17 }
 0x3fd   : > { %1791 = vmatpush3.msra.mxu1 %v2063_v18 }
 0x3fe   : > { %1792 = vmatprep.subr.mxu1 %v2234_v52 }
 0x3ff   : > { %1793 = vmatpush3.msra.mxu1 %v2240_v53 }
 0x400   : > { %1794 = vmatprep.subr.mxu1 %v2247_v56 }
 0x401   : > { %1795 = vmatpush3.msra.mxu1 %v2254_v57 }
 0x402   : > { %1796 = vmatprep.subr.mxu1 %v2261_v58 }
 0x403   : > { %1797 = vmatpush3.msra.mxu1 %v2268_v59 }
 0x404   : > { %1798 = vmatprep.subr.mxu1 %v2275_v60 }
 0x405   : > { %1799 = vmatpush3.msra.mxu1 %v2282_v61 }
 0x406   : > { %1800 = vmatprep.subr.mxu1 %v2287_v62 }
 0x407   : > { %1801 = vmatpush3.msra.mxu1 %v2293_v20 }
 0x408   : > { %1802 = vmatprep.subr.mxu1 %v2300_v22 }
 0x409   : > { %1803 = vmatpush3.msra.mxu1 %v2307_v23 }
 0x40a   : > { %1804 = vmatprep.subr.mxu1 %v2314_v26 }
 0x40b   : > { %1805 = vmatpush3.msra.mxu1 %v2321_v27  ;;  %v2624_v27 = vld [vmem:[#allocation17_spill] sm:$0xff] }
 0x40c   : > { %1806 = vmatprep.subr.mxu1 %v2328_v28  ;;  %v2625_v28 = vmov 0.0  }
 0x40d   : > { %1807 = vmatpush3.msra.mxu1 %v2335_v29  ;;  %v2626_v29 = vld [vmem:[#allocation16_spill] sm:$0xff] }
 0x4ae   : > { %v1217_v3 = vpop.f32.mrf.mxu1 }
 0x4af   : > { %v1224_v4 = vrot.slane %v1217_v3, 4  ;;  %v1236_v5 = vmul.f32 %v1217_v3, %v1217_v3 }
 0x4b0   : > { %v1219_v6 = vpop.f32.mrf.mxu1 }
 0x4b1   : > { %v1225_v7 = vadd.f32 %v1224_v4, %v1217_v3  ;;  %v1238_v8 = vrot.slane %v1236_v5, 4  ;;  %v1230_v9 = vrot.slane %v1219_v6, 4  ;;  %v1237_v10 = vmul.f32 %v1219_v6, %v1219_v6 }
 0x4b2   : > { %v1221_v11 = vpop.f32.mrf.mxu1 }
 0x4b3   : > { %v1226_v12 = vrot.slane %v1225_v7, 2  ;;  %v1239_v13 = vadd.f32 %v1238_v8, %v1236_v5  ;;  %v1231_v14 = vadd.f32 %v1230_v9, %v1219_v6  ;;  %v1244_v15 = vrot.slane %v1237_v10, 4 }
 0x4b4   : > { %v1222_v16 = vpop.f32.mrf.mxu1 }
 0x4b5   : > { %v1227_v17 = vadd.f32 %v1226_v12, %v1225_v7  ;;  %v1240_v18 = vrot.slane %v1239_v13, 2  ;;  %v1232_v21 = vrot.slane %v1231_v14, 2  ;;  %v1245_v52 = vadd.f32 %v1244_v15, %v1237_v10 }
 0x4b7   : > { %v1233_v53 = vadd.f32 %v1232_v21, %v1231_v14  ;;  %v1246_v56 = vrot.slane %v1245_v52, 2  ;;  %v1241_v57 = vadd.f32 %v1240_v18, %v1239_v13  ;;  %v1228_v58 = vrot.slane %v1227_v17, 1 }
 0x4b9   : > { %v1234_v59 = vrot.slane %v1233_v53, 1  ;;  %v1247_v60 = vadd.f32 %v1246_v56, %v1245_v52  ;;  %v1242_v61 = vrot.slane %v1241_v57, 1  ;;  %v1229_v22 = vadd.f32 %v1228_v58, %v1227_v17 }
 0x4bb   : > { %v1235_v62 = vadd.f32 %v1234_v59, %v1233_v53  ;;  %v1248_v20 = vrot.slane %v1247_v60, 1  ;;  %v1243_v26 = vadd.f32 %v1242_v61, %v1241_v57 }
 0x4bd   : > { %1314 = vmatprep.mubr.f32.mxu0 %v1235_v62  ;;  %v1249_v23 = vadd.f32 %v1248_v20, %v1247_v60 }
 0x4be   : > { %1315 = vmatmul.mubr.f32.vlgmr.msra.gmra.mxu0 %v1229_v22 }
 0x4bf   : > { %1384 = vmatprep.mubr.f32.mxu1 %v1249_v23  ;;  %1664 = vmatpush1.msk.msra.mxu0 %vm861_vm11, %v2624_v27 }
 0x4c0   : > { %1385 = vmatmul.mubr.f32.vlgmr.msra.gmra.mxu1 %v1243_v26  ;;  %1464 = vmatprep.mubr.f32.mxu0 %v2625_v28 }
 0x4c1   : > { %1666 = vmatprep.subr.msk.mxu0 %vm861_vm11, %v2626_v29 }
 0x57e   : > { %v1773_v45 = vpop.f32.mrf.mxu0 }
 0x580   : > { %v1774_v43 = vpop.f32.mrf.mxu0  ;;  %v1808_v38 = vpop.f32.mrf.mxu1 }
 0x581   : > { %v1775_v33 = vadd.f32 %v1774_v43, %v1773_v45 }
 0x582   : > { %v1809_v39 = vpop.f32.mrf.mxu1 }
 0x583   : > { %v1390_v25 = vmul.f32 0.00048828125, %v1775_v33  ;;  %v1810_v37 = vadd.f32 %v1809_v39, %v1808_v38 }
 0x585   : > { %v1392_v54 = vmul.f32 %v1390_v25, %v1390_v25  ;;  %v1391_v49 = vmul.f32 0.00048828125, %v1810_v37  ;;  %1665 = vmatmul.mubr.msk.f32.vlgmr.msra.gmra.mxu0 %vm857_vm12, %v1390_v25 }
 0x586   : > { %1667 = vmatpush1.msk.msra.mxu0 %vm861_vm11, %v2624_v27  ;;  %1538 = vmatprep.mubr.f32.mxu0 %v2625_v28 }
 0x587   : > { %v1393_v55 = vsub.f32 %v1391_v49, %v1392_v54 }
 0x589   : > { %v1394_v30 = vmax.f32 %v1393_v55, 0.0 }
 0x58b   : > { %v1395_v63 = vadd.f32 1e-05, %v1394_v30 }
 0x58d   : > { %1842 = vrsqrt.f32 %v1395_v63 }
 0x59a   : > { %v1843_v32 = vpop.eup %1842 }
 0x59b   : > { %1668 = vmatmul.mubr.msk.f32.vlgmr.msra.gmra.mxu0 %vm857_vm12, %v1843_v32 }
 0x645   : > { %v1466_v51 = vpop.f32.mrf.mxu0 }
 0x646   : > { %v1548_v41 = vrot.slane %v1466_v51, %v2627_v2 }
 0x647   : > { %v1468_v24 = vpop.f32.mrf.mxu0 }
 0x648   : > { %v1552_v19 = vrot.slane %v1468_v24, %v2627_v2  ;;  %v1553_v0 = vsub.f32 %v1217_v3, %v1548_v41 }
 0x64a   : > { %v1554_v44 = vsub.f32 %v1219_v6, %v1552_v19 }
 0x65b   : > { %v1540_v40 = vpop.f32.mrf.mxu0 }
 0x65c   : > { %v1558_v46 = vrot.slane %v1540_v40, %v2627_v2 }
 0x65d   : > { %v1542_v36 = vpop.f32.mrf.mxu0 }
 0x65e   : > { %v1563_v47 = vmul.f32 %v1558_v46, %v1553_v0  ;;  %v1562_v48 = vrot.slane %v1542_v36, %v2627_v2 }
 0x660   : > { %v1570_v35 = vmul.f32 %v1568_v50, %v1563_v47  ;;  %v1564_v34 = vmul.f32 %v1562_v48, %v1554_v44 }
 0x662   : > { %v1577_v31 = vadd.f32 %v1575_v1, %v1570_v35  ;;  %v1571_v42 = vmul.f32 %v1568_v50, %v1564_v34 }
 0x664   : > { %1579 = vst [vmem:[%s361_s19] sm:$0xff] %v1577_v31  ;;  %v1578_v3 = vadd.f32 %v1575_v1, %v1571_v42 }
 0x666   : > { %1580 = vst [vmem:[%s361_s19 + $0x8] sm:$0xff] %v1578_v3 }
 0x667 PF: > { %s20_s13 = sadd.s32 1, %s1850_s13  }
 0x668   : > { %p17_p4 = scmp.ge.s32.totalorder %s20_s13, 4  }
 0x66a   :  { %19 = sbr.rel (!%p17_p4) target bundleno = 1 (0x1), region = 97 }

</bundles_post_ra>
